<compile_context>
chip_gen: v7x
topology: tpu7x:2x2x1
jax: 0.10.0
libtpu: 0.0.40
codegen_flags: <defaults>
</compile_context>

<pallas_src>
import numpy as np

import jax
import jax.numpy as jnp
from jax.experimental import pallas as pl
from jax.experimental.pallas import tpu as pltpu


# ----------------------------- Pallas kernel ------------------------------- #

def _critic_kernel(x_ref, w1_ref, b1_ref, w2_ref, b2_ref, w3_ref, b3_ref,
                   w4_ref, b4_ref, o_ref):
    """Fused forward: 3 bf16 MXU matmuls (f32 accumulate) + VPU/XLU head."""
    h = jnp.dot(x_ref[...], w1_ref[...], preferred_element_type=jnp.float32)
    h = jnp.maximum(h + b1_ref[...], 0.0).astype(jnp.bfloat16)
    h = jnp.dot(h, w2_ref[...], preferred_element_type=jnp.float32)
    h = jnp.maximum(h + b2_ref[...], 0.0).astype(jnp.bfloat16)
    h = jnp.dot(h, w3_ref[...], preferred_element_type=jnp.float32)
    h = jnp.maximum(h + b3_ref[...], 0.0)
    # Final Linear(hidden, 1): VPU multiply + lane (XLU) reduce instead of an
    # N=1 MXU matmul -> no wasted MXU lanes.  b4 is a scalar read from SMEM.
    v = jnp.sum(h * w4_ref[...], axis=-1, keepdims=True) + b4_ref[0, 0]
    o_ref[...] = v.astype(o_ref.dtype)


# ----------------------- One-time parameter lowering ------------------------ #

def _round_up(x, m):
    return ((x + m - 1) // m) * m


def _conv_to_dense(w, b, in_shape, stride):
    """Lower Conv2d (OIHW weight, NCHW act, VALID padding) to a dense matmul on
    CHW-flattened activations: y_flat = x_flat @ Wd + bd  (torch flatten order)."""
    oc, c, kh, kw = w.shape
    _, h, ww = in_shape
    oh = (h - kh) // stride + 1
    ow = (ww - kw) // stride + 1
    wd = np.zeros((c * h * ww, oc * oh * ow), dtype=np.float32)
    for i in range(oh):
        for j in range(ow):
            out_idx = np.arange(oc) * (oh * ow) + i * ow + j
            for ki in range(kh):
                for kj in range(kw):
                    in_idx = (np.arange(c) * (h * ww)
                              + (i * stride + ki) * ww + (j * stride + kj))
                    wd[np.ix_(in_idx, out_idx)] = w[:, :, ki, kj].T
    bd = np.repeat(np.asarray(b, np.float32), oh * ow)
    return wd, bd, (oc, oh, ow)


def _pad_to(a, shape):
    return np.pad(a, [(0, s - d) for d, s in zip(a.shape, shape)])


def prepare_params(params):
    """Pre-permute / densify / zero-pad all weights once (trace-time constant).

    Weight matrices are stored as bf16 (MXU-rate, half the DMA); biases, the
    64->1 head vector and b4 stay f32 (tiny, free, better accuracy)."""
    w1 = np.asarray(params["w1"], np.float32)
    w2 = np.asarray(params["w2"], np.float32)
    w3 = np.asarray(params["w3"], np.float32)
    w4 = np.asarray(params["w4"], np.float32)
    b4 = np.asarray(params["b4"], np.float32)

    w1d, b1d, shape1 = _conv_to_dense(w1, params["b1"], (4, 16, 16), 2)  # (1024, 392)
    w2d, b2d, _ = _conv_to_dense(w2, params["b2"], shape1, 1)            # (392, 400)

    d0 = 4 * 16 * 16                     # 1024 (flattened obs)
    d1 = _round_up(w1d.shape[1], 128)    # 392 -> 512
    d2 = _round_up(w2d.shape[1], 128)    # 400 -> 512
    d3 = _round_up(w3.shape[0], 128)     # 64  -> 128

    return {
        "w1": jnp.asarray(_pad_to(w1d, (d0, d1)), dtype=jnp.bfloat16),
        "b1": jnp.asarray(_pad_to(b1d, (d1,)).reshape(1, d1)),
        "w2": jnp.asarray(_pad_to(w2d, (d1, d2)), dtype=jnp.bfloat16),
        "b2": jnp.asarray(_pad_to(b2d, (d2,)).reshape(1, d2)),
        "w3": jnp.asarray(_pad_to(w3.T, (d2, d3)), dtype=jnp.bfloat16),
        "b3": jnp.asarray(_pad_to(np.asarray(params["b3"], np.float32),
                                  (d3,)).reshape(1, d3)),
        "w4": jnp.asarray(_pad_to(w4, (1, d3))),          # f32, VPU head
        "b4": jnp.asarray(b4.reshape(1, 1)),              # f32 scalar -> SMEM
        "dims": (d0, d1, d2, d3),
    }


# ------------------------------- Forward ----------------------------------- #

def _choose_bm(bsz):
    """Batch row tile: single resident tile for small batches (block == full
    array, so the (8,128) rule is satisfied even for ragged bsz); otherwise the
    biggest tile <= 1024 rows that still gives >= 2 grid steps (amortizes the
    ~0.35 us/step pipeline overhead and keeps both v7x TensorCores busy)."""
    if bsz <= 256:
        return bsz
    return min(1024, _round_up((bsz + 1) // 2, 8))


def critic_forward(x, prep):
    """Fused Pallas forward of CriticNetwork for obs_dim=(4,16,16)."""
    bsz = x.shape[0]
    d0, d1, d2, d3 = prep["dims"]
    # NCHW contiguous -> per-sample CHW flatten; feed bf16 (halves input DMA,
    # MXU-rate layer-1 matmul).  Accumulation inside the kernel stays f32.
    x_flat = x.reshape(bsz, d0).astype(jnp.bfloat16)

    bm = _choose_bm(bsz)
    grid = (pl.cdiv(bsz, bm),)

    def full(shape):
        return pl.BlockSpec(shape, lambda i, _s=shape: (0,) * len(_s))

    # Advisory cost: FLOPs at the padded dims actually executed; bytes = streamed
    # bf16 activations + f32 output every call, bf16 weights / f32 biases once.
    flops = 2 * bsz * (d0 * d1 + d1 * d2 + d2 * d3 + d3)
    bytes_accessed = (2 * bsz * d0 + 4 * bsz
                      + 2 * (d0 * d1 + d1 * d2 + d2 * d3)
                      + 4 * (d1 + d2 + 2 * d3 + 1))

    return pl.pallas_call(
        _critic_kernel,
        out_shape=jax.ShapeDtypeStruct((bsz, 1), jnp.float32),
        grid_spec=pltpu.PrefetchScalarGridSpec(
            num_scalar_prefetch=0,
            grid=grid,
            in_specs=[
                pl.BlockSpec((bm, d0), lambda i: (i, 0)),   # activations, row-tiled
                full((d0, d1)), full((1, d1)),              # dense conv1 (bf16 W)
                full((d1, d2)), full((1, d2)),              # dense conv2 (bf16 W)
                full((d2, d3)), full((1, d3)),              # Linear(400,64) (bf16 W)
                full((1, d3)),                              # Linear(64,1) weight row
                pl.BlockSpec(memory_space=pltpu.MemorySpace.SMEM),  # b4 scalar
            ],
            out_specs=pl.BlockSpec((bm, 1), lambda i: (i, 0)),
        ),
        compiler_params=pltpu.CompilerParams(
            dimension_semantics=("parallel",),
            vmem_limit_bytes=32 * 1024 * 1024),
        cost_estimate=pl.CostEstimate(flops=flops, transcendentals=0,
                                      bytes_accessed=bytes_accessed),
    )(x_flat, prep["w1"], prep["b1"], prep["w2"], prep["b2"],
      prep["w3"], prep["b3"], prep["w4"], prep["b4"])


# --------------------------- Pure-JAX reference ----------------------------- #

def reference_forward(x, params):
    """Mirrors the PyTorch module exactly (conv + relu + conv + relu + MLP head)."""
    dn = ("NCHW", "OIHW", "NCHW")
    y1 = jax.lax.conv_general_dilated(x, params["w1"], (2, 2), "VALID",
                                      dimension_numbers=dn)
    y1 = jnp.maximum(y1 + params["b1"][None, :, None, None], 0.0)
    y2 = jax.lax.conv_general_dilated(y1, params["w2"], (1, 1), "VALID",
                                      dimension_numbers=dn)
    y2 = jnp.maximum(y2 + params["b2"][None, :, None, None], 0.0)
    feat = y2.reshape(y2.shape[0], -1)
    h = jnp.maximum(feat @ params["w3"].T + params["b3"], 0.0)
    return h @ params["w4"].T + params["b4"]


# ------------------------- Deterministic parameters ------------------------- #

def init_params(key):
    ks = jax.random.split(key, 8)

    def u(k, shape, fan_in):
        bound = 1.0 / jnp.sqrt(jnp.float32(fan_in))
        return jax.random.uniform(k, shape, jnp.float32, -bound, bound)

    return {
        # Conv2d(4, 8, 4, stride=2)
        "w1": u(ks[0], (8, 4, 4, 4), 4 * 4 * 4),
        "b1": u(ks[1], (8,), 4 * 4 * 4),
        # Conv2d(8, 16, 3, stride=1)
        "w2": u(ks[2], (16, 8, 3, 3), 8 * 3 * 3),
        "b2": u(ks[3], (16,), 8 * 3 * 3),
        # Linear(400, 64)
        "w3": u(ks[4], (64, 400), 400),
        "b3": u(ks[5], (64,), 400),
        # Linear(64, 1)
        "w4": u(ks[6], (1, 64), 64),
        "b4": u(ks[7], (1,), 64),
    }


# ---------------------------------- main ------------------------------------ #

if __name__ == "__main__":
    key = jax.random.PRNGKey(0)
    k_x, k_p = jax.random.split(key)

    # obs_dim = (4, 16, 16): 3-D obs with obs_dim[1] <= 32 -> gridworld encoder,
    # hidden_size = GRIDWORLD_HIDDEN_SIZE = 64, encoder_output_size = 16*5*5 = 400.
    x = jax.random.normal(k_x, (2, 4, 16, 16), dtype=jnp.float32)
    params = init_params(k_p)
    prep = prepare_params(params)        # one-time weight lowering (not per-call)

    out = jax.block_until_ready(critic_forward(x, prep))
    assert out.shape == (2, 1), out.shape

    ref = jax.block_until_ready(reference_forward(x, params))
    # bf16 weights/activations with f32 accumulation vs a pure-f32 reference:
    # expect ~1e-2 error, so the tolerance is loosened accordingly.
    err = float(jnp.max(jnp.abs(out - ref)))
    assert jnp.allclose(out, ref, rtol=5e-2, atol=5e-2), (out, ref, err)

    print("KERNEL_OK")
</pallas_src>

<mosaic_0001>
module attributes {stable_mosaic.version = 11 : i64} {
  func.func @_critic_kernel(%arg0: i32, %arg1: memref<2x1024xbf16, #tpu.memory_space<vmem>>, %arg2: memref<1024x512xbf16, #tpu.memory_space<vmem>>, %arg3: memref<1x512xf32, #tpu.memory_space<vmem>>, %arg4: memref<512x512xbf16, #tpu.memory_space<vmem>>, %arg5: memref<1x512xf32, #tpu.memory_space<vmem>>, %arg6: memref<512x128xbf16, #tpu.memory_space<vmem>>, %arg7: memref<1x128xf32, #tpu.memory_space<vmem>>, %arg8: memref<1x128xf32, #tpu.memory_space<vmem>>, %arg9: memref<1x1xf32, #tpu.memory_space<smem>>, %arg10: memref<2x1xf32, #tpu.memory_space<vmem>>) attributes {dimension_semantics = [#tpu.dimension_semantics<parallel>], iteration_bounds = array<i64: 1>, scalar_prefetch = 0 : i64, scratch_operands = 0 : i64, tpu.core_type = #tpu.core_type<tc>, window_params = [{transform_indices = @transform_0, window_bounds = array<i64: 2, 1024>}, {pipeline_mode = #tpu.pipeline_mode<synchronous>, transform_indices = @transform_1, window_bounds = array<i64: 1024, 512>}, {pipeline_mode = #tpu.pipeline_mode<synchronous>, transform_indices = @transform_2, window_bounds = array<i64: 1, 512>}, {pipeline_mode = #tpu.pipeline_mode<synchronous>, transform_indices = @transform_3, window_bounds = array<i64: 512, 512>}, {pipeline_mode = #tpu.pipeline_mode<synchronous>, transform_indices = @transform_4, window_bounds = array<i64: 1, 512>}, {pipeline_mode = #tpu.pipeline_mode<synchronous>, transform_indices = @transform_5, window_bounds = array<i64: 512, 128>}, {pipeline_mode = #tpu.pipeline_mode<synchronous>, transform_indices = @transform_6, window_bounds = array<i64: 1, 128>}, {pipeline_mode = #tpu.pipeline_mode<synchronous>, transform_indices = @transform_7, window_bounds = array<i64: 1, 128>}, {transform_indices = @transform_8, window_bounds = array<i64: 1, 1>}, {transform_indices = @transform_9, window_bounds = array<i64: 2, 1>}]} {
    %c0 = arith.constant 0 : index
    %c0_0 = arith.constant 0 : index
    %0 = vector.load %arg1[%c0, %c0_0] : memref<2x1024xbf16, #tpu.memory_space<vmem>>, vector<2x1024xbf16>
    %c0_1 = arith.constant 0 : index
    %c0_2 = arith.constant 0 : index
    %1 = vector.load %arg2[%c0_1, %c0_2] : memref<1024x512xbf16, #tpu.memory_space<vmem>>, vector<1024x512xbf16>
    %cst = arith.constant dense<0.000000e+00> : vector<2x512xf32>
    %2 = tpu.matmul %0, %1, %cst {dimension_numbers = #tpu.dot_dimension_numbers<[1], [0], [0], [1], [0, 0, 1, 1], [], []>} : vector<2x1024xbf16>, vector<1024x512xbf16>, vector<2x512xf32> -> vector<2x512xf32>
    %c0_3 = arith.constant 0 : index
    %c0_4 = arith.constant 0 : index
    %3 = vector.load %arg3[%c0_3, %c0_4] : memref<1x512xf32, #tpu.memory_space<vmem>>, vector<1x512xf32>
    %4 = vector.broadcast %3 : vector<1x512xf32> to vector<2x512xf32>
    %5 = arith.addf %2, %4 : vector<2x512xf32>
    %cst_5 = arith.constant 0.000000e+00 : f32
    %6 = vector.broadcast %cst_5 : f32 to vector<2x512xf32>
    %7 = arith.maximumf %5, %6 : vector<2x512xf32>
    %8 = arith.truncf %7 : vector<2x512xf32> to vector<2x512xbf16>
    %c0_6 = arith.constant 0 : index
    %c0_7 = arith.constant 0 : index
    %9 = vector.load %arg4[%c0_6, %c0_7] : memref<512x512xbf16, #tpu.memory_space<vmem>>, vector<512x512xbf16>
    %cst_8 = arith.constant dense<0.000000e+00> : vector<2x512xf32>
    %10 = tpu.matmul %8, %9, %cst_8 {dimension_numbers = #tpu.dot_dimension_numbers<[1], [0], [0], [1], [0, 0, 1, 1], [], []>} : vector<2x512xbf16>, vector<512x512xbf16>, vector<2x512xf32> -> vector<2x512xf32>
    %c0_9 = arith.constant 0 : index
    %c0_10 = arith.constant 0 : index
    %11 = vector.load %arg5[%c0_9, %c0_10] : memref<1x512xf32, #tpu.memory_space<vmem>>, vector<1x512xf32>
    %12 = vector.broadcast %11 : vector<1x512xf32> to vector<2x512xf32>
    %13 = arith.addf %10, %12 : vector<2x512xf32>
    %cst_11 = arith.constant 0.000000e+00 : f32
    %14 = vector.broadcast %cst_11 : f32 to vector<2x512xf32>
    %15 = arith.maximumf %13, %14 : vector<2x512xf32>
    %16 = arith.truncf %15 : vector<2x512xf32> to vector<2x512xbf16>
    %c0_12 = arith.constant 0 : index
    %c0_13 = arith.constant 0 : index
    %17 = vector.load %arg6[%c0_12, %c0_13] : memref<512x128xbf16, #tpu.memory_space<vmem>>, vector<512x128xbf16>
    %cst_14 = arith.constant dense<0.000000e+00> : vector<2x128xf32>
    %18 = tpu.matmul %16, %17, %cst_14 {dimension_numbers = #tpu.dot_dimension_numbers<[1], [0], [0], [1], [0, 0, 1, 1], [], []>} : vector<2x512xbf16>, vector<512x128xbf16>, vector<2x128xf32> -> vector<2x128xf32>
    %c0_15 = arith.constant 0 : index
    %c0_16 = arith.constant 0 : index
    %19 = vector.load %arg7[%c0_15, %c0_16] : memref<1x128xf32, #tpu.memory_space<vmem>>, vector<1x128xf32>
    %20 = vector.broadcast %19 : vector<1x128xf32> to vector<2x128xf32>
    %21 = arith.addf %18, %20 : vector<2x128xf32>
    %cst_17 = arith.constant 0.000000e+00 : f32
    %22 = vector.broadcast %cst_17 : f32 to vector<2x128xf32>
    %23 = arith.maximumf %21, %22 : vector<2x128xf32>
    %c0_18 = arith.constant 0 : index
    %c0_19 = arith.constant 0 : index
    %24 = vector.load %arg8[%c0_18, %c0_19] : memref<1x128xf32, #tpu.memory_space<vmem>>, vector<1x128xf32>
    %25 = vector.broadcast %24 : vector<1x128xf32> to vector<2x128xf32>
    %26 = arith.mulf %23, %25 : vector<2x128xf32>
    %cst_20 = arith.constant dense<0.000000e+00> : vector<2xf32>
    %27 = vector.multi_reduction <add>, %26, %cst_20 [1] : vector<2x128xf32> to vector<2xf32>
    %28 = vector.shape_cast %27 : vector<2xf32> to vector<2x1xf32>
    %c0_21 = arith.constant 0 : index
    %c0_22 = arith.constant 0 : index
    %29 = memref.load %arg9[%c0_21, %c0_22] : memref<1x1xf32, #tpu.memory_space<smem>>
    %30 = vector.broadcast %29 : f32 to vector<2x1xf32>
    %31 = arith.addf %28, %30 : vector<2x1xf32>
    %c0_23 = arith.constant 0 : index
    %c0_24 = arith.constant 0 : index
    %32 = vector.load %arg10[%c0_23, %c0_24] : memref<2x1xf32, #tpu.memory_space<vmem>>, vector<2x1xf32>
    tpu.vector_store %arg10[%c0_23, %c0_24], %31 {strides = array<i32>} : memref<2x1xf32, #tpu.memory_space<vmem>>, vector<2x1xf32>,
    return
  }
  func.func @transform_0(%arg0: i32) -> (i32, i32) {
    %c0_i32 = arith.constant 0 : i32
    %c0_i32_0 = arith.constant 0 : i32
    return %arg0, %c0_i32 : i32, i32
  }
  func.func @transform_1(%arg0: i32) -> (i32, i32) {
    %c0_i32 = arith.constant 0 : i32
    %c0_i32_0 = arith.constant 0 : i32
    %c0_i32_1 = arith.constant 0 : i32
    return %c0_i32, %c0_i32_0 : i32, i32
  }
  func.func @transform_2(%arg0: i32) -> (i32, i32) {
    %c0_i32 = arith.constant 0 : i32
    %c0_i32_0 = arith.constant 0 : i32
    %c0_i32_1 = arith.constant 0 : i32
    return %c0_i32, %c0_i32_0 : i32, i32
  }
  func.func @transform_3(%arg0: i32) -> (i32, i32) {
    %c0_i32 = arith.constant 0 : i32
    %c0_i32_0 = arith.constant 0 : i32
    %c0_i32_1 = arith.constant 0 : i32
    return %c0_i32, %c0_i32_0 : i32, i32
  }
  func.func @transform_4(%arg0: i32) -> (i32, i32) {
    %c0_i32 = arith.constant 0 : i32
    %c0_i32_0 = arith.constant 0 : i32
    %c0_i32_1 = arith.constant 0 : i32
    return %c0_i32, %c0_i32_0 : i32, i32
  }
  func.func @transform_5(%arg0: i32) -> (i32, i32) {
    %c0_i32 = arith.constant 0 : i32
    %c0_i32_0 = arith.constant 0 : i32
    %c0_i32_1 = arith.constant 0 : i32
    return %c0_i32, %c0_i32_0 : i32, i32
  }
  func.func @transform_6(%arg0: i32) -> (i32, i32) {
    %c0_i32 = arith.constant 0 : i32
    %c0_i32_0 = arith.constant 0 : i32
    %c0_i32_1 = arith.constant 0 : i32
    return %c0_i32, %c0_i32_0 : i32, i32
  }
  func.func @transform_7(%arg0: i32) -> (i32, i32) {
    %c0_i32 = arith.constant 0 : i32
    %c0_i32_0 = arith.constant 0 : i32
    %c0_i32_1 = arith.constant 0 : i32
    return %c0_i32, %c0_i32_0 : i32, i32
  }
  func.func @transform_8(%arg0: i32) -> (i32, i32) {
    %c0_i32 = arith.constant 0 : i32
    %c0_i32_0 = arith.constant 0 : i32
    %c0_i32_1 = arith.constant 0 : i32
    return %c0_i32, %c0_i32_0 : i32, i32
  }
  func.func @transform_9(%arg0: i32) -> (i32, i32) {
    %c0_i32 = arith.constant 0 : i32
    %c0_i32_0 = arith.constant 0 : i32
    return %arg0, %c0_i32 : i32, i32
  }
}

</mosaic_0001>

<bundles_post_ra>
// kernel: tpu_custom_call.1
= control target key start
LH: loop header
LB: loop body
LE: loop exit
PB: predicated region body
PF: predicated region fallthrough
CT: control target
= control target key end

     0   :  { %15 = vsyncpa [#allocation4], 0  ;;  %s4773_s0 = inlined_call_operand.hbm [shape: bf16[2,1024], index: 0, kind: input, shape index: {}]   ;;  %s4774_s1 = inlined_call_operand.hbm [shape: bf16[1024,512], index: 1, kind: input, shape index: {}]   ;;  %s4775_s2 = inlined_call_operand.vmem [shape: f32[1,512], index: 2, kind: input, shape index: {}]   ;;  %s4776_s3 = inlined_call_operand.hbm [shape: bf16[512,512], index: 3, kind: input, shape index: {}]   ;;  %s4777_s4 = inlined_call_operand.vmem [shape: f32[1,512], index: 4, kind: input, shape index: {}]   ;;  %s4778_s5 = inlined_call_operand.hbm [shape: bf16[512,128], index: 5, kind: input, shape index: {}]   ;;  %s4779_s6 = inlined_call_operand.vmem [shape: f32[1,128], index: 6, kind: input, shape index: {}]   ;;  %s4780_s7 = inlined_call_operand.vmem [shape: f32[1,128], index: 7, kind: input, shape index: {}]   ;;  %s4781_s8 = inlined_call_operand.<no memory space> [shape: f32[1,1], index: 8, kind: input, shape index: {}]   ;;  %s4782_s9 = inlined_call_operand.vmem [shape: f32[2,1], index: 9, kind: output, shape index: {}]  }
   0x1   :  { %16 = vsyncpa [#allocation6], 0 }
   0x2   :  { %17 = vsyncpa [#allocation9], 0  ;;  %s4584_s30 = smov [#allocation5]   ;;  %s4490_s13 = scalar_lea.hbm %s4774_s1, 32768 }
   0x3   :  { %s33_s10 = sshll.u32 %s4584_s30, 4  ;;  %p4491_p0 = scmp.ne.s32.totalorder %s4774_s1, %s4490_s13  ;;  %s34_s10 = int_to_ptr.vmem [resolvable:$true] %s33_s10 }
   0x4   :  { %p4494_p1 = scmp.lt.u32.totalorder %s4490_s13, %s4774_s1 }
   0x6   :  { %p4496_p2 = pnand %p4494_p1, %p4491_p0 }
   0x8   :  { %4499 = shalt.err (!%p4496_p2)
}
   0x9   :  { %s4500_s18 = scalar_lea.vmem %s34_s10, 32768  ;;  %p4505_p4 = scmp.lt.s32.totalorder %s34_s10, %s34_s10 }
   0xa   :  { %p4501_p3 = scmp.ne.s32.totalorder %s34_s10, %s4500_s18  ;;  %p4506_p5 = scmp.lt.s32.totalorder %s4500_s18, %s4500_s18 }
   0xc   :  { %p4507_p6 = por %p4506_p5, %p4505_p4 }
   0xe   :  { %p4508_p7 = pnand %p4507_p6, %p4501_p3 }
  0x10   :  { %4511 = shalt.err (!%p4508_p7)
}
  0x11   :  { %s4585_s19 = smov 256   ;;  %s4586_s20 = smov 16  }
  0x12   :  { %39 = dma.hbm_to_vmem [thread:$0]  %s4774_s1, 32768, %s34_s10, [#allocation6], %s4585_s19, %s4585_s19, %s4586_s20  }
  0x13   :  { %s4587_s23 = smov [#allocation3]   ;;  %s4588_s25 = smov [#allocation7]  }
  0x14   :  { %s24_s24 = sshll.u32 %s4587_s23, 4  ;;  %s47_s26 = sshll.u32 %s4588_s25, 4  ;;  %s25_s24 = int_to_ptr.vmem [resolvable:$true] %s24_s24  ;;  %s48_s26 = int_to_ptr.vmem [resolvable:$true] %s47_s26 }
  0x15   :  { %s4512_s29 = scalar_lea.hbm %s4773_s0, 128 }
  0x16   :  { %p4513_p8 = scmp.ne.s32.totalorder %s4773_s0, %s4512_s29  ;;  %p4516_p9 = scmp.lt.u32.totalorder %s4512_s29, %s4773_s0 }
  0x18   :  { %p4518_p10 = pnand %p4516_p9, %p4513_p8 }
  0x1a   :  { %4521 = shalt.err (!%p4518_p10)
}
  0x1b   :  { %s4522_s1 = scalar_lea.vmem %s25_s24, 128  ;;  %p4527_p12 = scmp.lt.s32.totalorder %s25_s24, %s25_s24 }
  0x1c   :  { %p4523_p11 = scmp.ne.s32.totalorder %s25_s24, %s4522_s1  ;;  %p4528_p13 = scmp.lt.s32.totalorder %s4522_s1, %s4522_s1 }
  0x1e   :  { %p4529_p0 = por %p4528_p13, %p4527_p12 }
  0x20   :  { %p4530_p1 = pnand %p4529_p0, %p4523_p11 }
  0x22   :  { %4533 = shalt.err (!%p4530_p1)
}
  0x23   :  { %27 = dma.hbm_to_vmem [thread:$0]  %s4773_s0, 128, %s25_s24, [#allocation4]  }
  0x24   :  { %s4534_s17 = scalar_lea.hbm %s4776_s3, 16384 }
  0x25   :  { %p4535_p2 = scmp.ne.s32.totalorder %s4776_s3, %s4534_s17  ;;  %p4538_p3 = scmp.lt.u32.totalorder %s4534_s17, %s4776_s3 }
  0x27   :  { %p4540_p4 = pnand %p4538_p3, %p4535_p2 }
  0x29   :  { %4543 = shalt.err (!%p4540_p4)
}
  0x2a   :  { %s4544_s25 = scalar_lea.vmem %s48_s26, 16384  ;;  %p4549_p6 = scmp.lt.s32.totalorder %s48_s26, %s48_s26 }
  0x2b   :  { %p4545_p5 = scmp.ne.s32.totalorder %s48_s26, %s4544_s25  ;;  %p4550_p7 = scmp.lt.s32.totalorder %s4544_s25, %s4544_s25 }
  0x2d   :  { %p4551_p8 = por %p4550_p7, %p4549_p6 }
  0x2f   :  { %p4552_p9 = pnand %p4551_p8, %p4545_p5 }
  0x31   :  { %4555 = shalt.err (!%p4552_p9)
}
  0x32   :  { %53 = dma.hbm_to_vmem [thread:$0]  %s4776_s3, 16384, %s48_s26, [#allocation6], %s4585_s19, %s4585_s19, %s4586_s20  }
  0x33   :  { %s4589_s27 = smov [#allocation8]   ;;  %s4556_s11 = scalar_lea.hbm %s4778_s5, 4096 }
  0x34   :  { %s61_s28 = sshll.u32 %s4589_s27, 4  ;;  %p4557_p10 = scmp.ne.s32.totalorder %s4778_s5, %s4556_s11  ;;  %s62_s28 = int_to_ptr.vmem [resolvable:$true] %s61_s28 }
  0x35   :  { %p4560_p11 = scmp.lt.u32.totalorder %s4556_s11, %s4778_s5 }
  0x37   :  { %p4562_p12 = pnand %p4560_p11, %p4557_p10 }
  0x39   :  { %4565 = shalt.err (!%p4562_p12)
}
  0x3a   :  { %s4566_s14 = scalar_lea.vmem %s62_s28, 4096  ;;  %p4571_p0 = scmp.lt.s32.totalorder %s62_s28, %s62_s28 }
  0x3b   :  { %p4567_p13 = scmp.ne.s32.totalorder %s62_s28, %s4566_s14  ;;  %p4572_p1 = scmp.lt.s32.totalorder %s4566_s14, %s4566_s14 }
  0x3d   :  { %p4573_p2 = por %p4572_p1, %p4571_p0 }
  0x3f   :  { %p4574_p3 = pnand %p4573_p2, %p4567_p13 }
  0x41   :  { %4577 = shalt.err (!%p4574_p3)
}
  0x42   :  { %s4590_s3 = smov 64   ;;  %s4591_s19 = smov 4  }
  0x43   :  { %67 = dma.hbm_to_vmem [thread:$0]  %s4778_s5, 4096, %s62_s28, [#allocation9], %s4590_s3, %s4590_s3, %s4591_s19  }
  0x44   :  { %4578 = dma.done.wait [#allocation4], 128  }
  0x45   :  { %4579 = vsyncadd [#allocation4], 4294967168 }
  0x46   :  { %4580 = dma.done.wait [#allocation6], 49152  }
  0x47   :  { %4581 = vsyncadd [#allocation6], 4294918144 }
  0x48   :  { %4582 = dma.done.wait [#allocation9], 4096  }
  0x49   :  { %4583 = vsyncadd [#allocation9], 4294963200  ;;  %v3881_v0 = vld [vmem:[#allocation5 + $0x4] ss:$16 sps:$4 sm:$0xff]   ;;  %v3883_v1 = vld [vmem:[#allocation5 + $0xc] ss:$16 sps:$4 sm:$0xff]   ;;  %v346_v36 = vlaneseq }
  0x4a   :  { %1704 = vmatprep.subr.bf16.mxu0 %v3881_v0  ;;  %v3885_v2 = vld [vmem:[#allocation5] ss:$16 sps:$4 sm:$0xff]   ;;  %v3886_v3 = vld [vmem:[#allocation5 + $0x8] ss:$16 sps:$4 sm:$0xff]   ;;  %1868 = vmatprep.subr.bf16.mxu1 %v3883_v1  ;;  %v3887_v4 = vld [vmem:[#allocation5 + $0x24] ss:$16 sps:$4 sm:$0xff]  }
  0x4b   :  { %1705 = vmatpush1.bf16.msra.mxu0 %v3885_v2  ;;  %1869 = vmatpush1.bf16.msra.mxu1 %v3886_v3  ;;  %v3889_v5 = vld [vmem:[#allocation5 + $0x2c] ss:$16 sps:$4 sm:$0xff]   ;;  %v3891_v6 = vld [vmem:[#allocation5 + $0x20] ss:$16 sps:$4 sm:$0xff]   ;;  %v3892_v7 = vld [vmem:[#allocation5 + $0x28] ss:$16 sps:$4 sm:$0xff]  }
  0x4c   :  { %1706 = vmatprep.subr.bf16.mxu0 %v3887_v4  ;;  %1870 = vmatprep.subr.bf16.mxu1 %v3889_v5  ;;  %v3893_v8 = vld [vmem:[#allocation5 + $0x44] ss:$16 sps:$4 sm:$0xff]   ;;  %v3895_v9 = vld [vmem:[#allocation5 + $0x4c] ss:$16 sps:$4 sm:$0xff]   ;;  %v3897_v10 = vld [vmem:[#allocation5 + $0x40] ss:$16 sps:$4 sm:$0xff]  }
  0x4d   :  { %v3898_v11 = vld [vmem:[#allocation5 + $0x48] ss:$16 sps:$4 sm:$0xff]   ;;  %v3899_v12 = vld [vmem:[#allocation5 + $0x64] ss:$16 sps:$4 sm:$0xff]   ;;  %v3901_v13 = vld [vmem:[#allocation5 + $0x6c] ss:$16 sps:$4 sm:$0xff]  }
  0x4e   :  { %v3903_v14 = vld [vmem:[#allocation5 + $0x60] ss:$16 sps:$4 sm:$0xff]   ;;  %v3904_v15 = vld [vmem:[#allocation5 + $0x68] ss:$16 sps:$4 sm:$0xff]   ;;  %v3905_v16 = vld [vmem:[#allocation5 + $0x84] ss:$16 sps:$4 sm:$0xff]  }
  0x4f   :  { %1707 = vmatpush1.bf16.msra.mxu0 %v3891_v6  ;;  %1871 = vmatpush1.bf16.msra.mxu1 %v3892_v7  ;;  %v3907_v17 = vld [vmem:[#allocation5 + $0x8c] ss:$16 sps:$4 sm:$0xff]   ;;  %v3909_v18 = vld [vmem:[#allocation5 + $0x80] ss:$16 sps:$4 sm:$0xff]   ;;  %v3910_v19 = vld [vmem:[#allocation5 + $0x88] ss:$16 sps:$4 sm:$0xff]  }
  0x50   :  { %1708 = vmatprep.subr.bf16.mxu0 %v3893_v8  ;;  %1872 = vmatprep.subr.bf16.mxu1 %v3895_v9  ;;  %v3911_v20 = vld [vmem:[#allocation5 + $0xa4] ss:$16 sps:$4 sm:$0xff]   ;;  %v3913_v21 = vld [vmem:[#allocation5 + $0xac] ss:$16 sps:$4 sm:$0xff]   ;;  %v3915_v22 = vld [vmem:[#allocation5 + $0xa0] ss:$16 sps:$4 sm:$0xff]  }
  0x51   :  { %v3916_v23 = vld [vmem:[#allocation5 + $0xa8] ss:$16 sps:$4 sm:$0xff]   ;;  %v3917_v24 = vld [vmem:[#allocation5 + $0xc4] ss:$16 sps:$4 sm:$0xff]   ;;  %v3919_v25 = vld [vmem:[#allocation5 + $0xcc] ss:$16 sps:$4 sm:$0xff]  }
  0x52   :  { %v3921_v26 = vld [vmem:[#allocation5 + $0xc0] ss:$16 sps:$4 sm:$0xff]   ;;  %v3922_v27 = vld [vmem:[#allocation5 + $0xc8] ss:$16 sps:$4 sm:$0xff]   ;;  %v3923_v28 = vld [vmem:[#allocation5 + $0xe4] ss:$16 sps:$4 sm:$0xff]  }
  0x53   :  { %1709 = vmatpush1.bf16.msra.mxu0 %v3897_v10  ;;  %1873 = vmatpush1.bf16.msra.mxu1 %v3898_v11  ;;  %v3925_v29 = vld [vmem:[#allocation5 + $0xec] ss:$16 sps:$4 sm:$0xff]   ;;  %v3927_v30 = vld [vmem:[#allocation5 + $0xe0] ss:$16 sps:$4 sm:$0xff]   ;;  %v3928_v31 = vld [vmem:[#allocation5 + $0xe8] ss:$16 sps:$4 sm:$0xff]  }
  0x54   :  { %1710 = vmatprep.subr.bf16.mxu0 %v3899_v12  ;;  %1874 = vmatprep.subr.bf16.mxu1 %v3901_v13  ;;  %v3929_v32 = vld [vmem:[#allocation5 + $0x104] ss:$16 sps:$4 sm:$0xff]   ;;  %v3931_v33 = vld [vmem:[#allocation5 + $0x10c] ss:$16 sps:$4 sm:$0xff]   ;;  %v3933_v34 = vld [vmem:[#allocation5 + $0x100] ss:$16 sps:$4 sm:$0xff]  }
  0x55   :  { %v3934_v35 = vld [vmem:[#allocation5 + $0x108] ss:$16 sps:$4 sm:$0xff]   ;;  %v4592_v37 = vmov 1966171168   ;;  %v3935_v39 = vld [vmem:[#allocation5 + $0x124] ss:$16 sps:$4 sm:$0xff]  }
  0x56   :  { %v369_v38 = vunpack.c.l.s4 %v4592_v37  ;;  %v3937_v40 = vld [vmem:[#allocation5 + $0x12c] ss:$16 sps:$4 sm:$0xff]   ;;  %v3939_v41 = vld [vmem:[#allocation5 + $0x120] ss:$16 sps:$4 sm:$0xff]   ;;  %v4697_v42 = vshrl.u32 %v346_v36, 7  ;;  %vm3354_vm0 = vcmask 1041408  }
  0x57   :  { %1711 = vmatpush1.bf16.msra.mxu0 %v3903_v14  ;;  %1875 = vmatpush1.bf16.msra.mxu1 %v3904_v15  ;;  %v3940_v44 = vld [vmem:[#allocation5 + $0x128] ss:$16 sps:$4 sm:$0xff]   ;;  %v3941_v45 = vld [vmem:[#allocation5 + $0x144] ss:$16 sps:$4 sm:$0xff]   ;;  %v3943_v46 = vld [vmem:[#allocation5 + $0x14c] ss:$16 sps:$4 sm:$0xff]  }
  0x58   :  { %1712 = vmatprep.subr.bf16.mxu0 %v3905_v16  ;;  %1876 = vmatprep.subr.bf16.mxu1 %v3907_v17  ;;  %v370_v43 = vunpack.c.0.s8 %v369_v38  ;;  %v3945_v47 = vld [vmem:[#allocation5 + $0x140] ss:$16 sps:$4 sm:$0xff]   ;;  %v3946_v48 = vld [vmem:[#allocation5 + $0x148] ss:$16 sps:$4 sm:$0xff]   ;;  %v3947_v50 = vld [vmem:[#allocation5 + $0x164] ss:$16 sps:$4 sm:$0xff]  }
  0x59   :  { %v3949_v51 = vld [vmem:[#allocation5 + $0x16c] ss:$16 sps:$4 sm:$0xff]   ;;  %v3951_v53 = vld [vmem:[#allocation5 + $0x160] ss:$16 sps:$4 sm:$0xff]   ;;  %v3952_v55 = vld [vmem:[#allocation5 + $0x168] ss:$16 sps:$4 sm:$0xff]  }
  0x5a   :  { %v4700_v49 = vsub.s32 %v370_v43, %v4697_v42  ;;  %v87_v52 = vld [vmem:[#allocation3] sm:$0xff]  ;;  %v3953_v56 = vld [vmem:[#allocation5 + $0x184] ss:$16 sps:$4 sm:$0xff]   ;;  %v3957_v59 = vld [vmem:[#allocation5 + $0x180] ss:$16 sps:$4 sm:$0xff]   ;;  %vm3361_vm1 = vcmask 1024  }
  0x5b   :  { %1713 = vmatpush1.bf16.msra.mxu0 %v3909_v18  ;;  %1877 = vmatpush1.bf16.msra.mxu1 %v3910_v19  ;;  %v3955_v57 = vld [vmem:[#allocation5 + $0x18c] ss:$16 sps:$4 sm:$0xff]   ;;  %v3958_v61 = vld [vmem:[#allocation5 + $0x188] ss:$16 sps:$4 sm:$0xff]   ;;  %v3959_v62 = vld [vmem:[#allocation5 + $0x1a4] ss:$16 sps:$4 sm:$0xff]   ;;  %v367_v9 = vcombine.high %v87_v52, %v87_v52 }
  0x5c   :  { %1714 = vmatprep.subr.bf16.mxu0 %v3911_v20  ;;  %1878 = vmatprep.subr.bf16.mxu1 %v3913_v21  ;;  %v374_v54 = vrot.slane %v87_v52, %v4700_v49  ;;  %v3961_v63 = vld [vmem:[#allocation5 + $0x1ac] ss:$16 sps:$4 sm:$0xff]   ;;  %v3963_v0 = vld [vmem:[#allocation5 + $0x1a0] ss:$16 sps:$4 sm:$0xff]   ;;  %v3964_v1 = vld [vmem:[#allocation5 + $0x1a8] ss:$16 sps:$4 sm:$0xff]  }
  0x5d   :  { %v3965_v2 = vld [vmem:[#allocation5 + $0x1c4] ss:$16 sps:$4 sm:$0xff]   ;;  %v3967_v3 = vld [vmem:[#allocation5 + $0x1cc] ss:$16 sps:$4 sm:$0xff]   ;;  %v3969_v4 = vld [vmem:[#allocation5 + $0x1c0] ss:$16 sps:$4 sm:$0xff]   ;;  %v381_v13 = vrot.slane %v367_v9, %v4700_v49 }
  0x5e   :  { %v382_v58 = vcombine.high %v374_v54, %v374_v54  ;;  %v3970_v5 = vld [vmem:[#allocation5 + $0x1c8] ss:$16 sps:$4 sm:$0xff]   ;;  %v3971_v6 = vld [vmem:[#allocation5 + $0x1e4] ss:$16 sps:$4 sm:$0xff]   ;;  %v3973_v7 = vld [vmem:[#allocation5 + $0x1ec] ss:$16 sps:$4 sm:$0xff]   ;;  %v4706_v15 = vrot.slane %v374_v54, %v4700_v49 }
  0x5f   :  { %1715 = vmatpush1.bf16.msra.mxu0 %v3915_v22  ;;  %1879 = vmatpush1.bf16.msra.mxu1 %v3916_v23  ;;  %v3975_v8 = vld [vmem:[#allocation5 + $0x1e0] ss:$16 sps:$4 sm:$0xff]   ;;  %v3976_v10 = vld [vmem:[#allocation5 + $0x1e8] ss:$16 sps:$4 sm:$0xff]   ;;  %v3979_v11 = vld [vmem:[#allocation5 + $0x204] ss:$16 sps:$4 sm:$0xff]   ;;  %v383_v16 = vcombine.high %v381_v13, %v381_v13  ;;  %v4712_v21 = vrot.slane %v381_v13, %v4700_v49 }
  0x60   :  { %1716 = vmatprep.subr.bf16.mxu0 %v3917_v24  ;;  %1880 = vmatprep.subr.bf16.mxu1 %v3919_v25  ;;  %v404_v60 = vrot.slane %v382_v58, %v4700_v49  ;;  %v3982_v12 = vld [vmem:[#allocation5 + $0x20c] ss:$16 sps:$4 sm:$0xff]   ;;  %v3977_v14 = vld [vmem:[#allocation5 + $0x200] ss:$16 sps:$4 sm:$0xff]   ;;  %v3980_v17 = vld [vmem:[#allocation5 + $0x208] ss:$16 sps:$4 sm:$0xff]  }
  0x61   :  { %v3985_v18 = vld [vmem:[#allocation5 + $0x224] ss:$16 sps:$4 sm:$0xff]   ;;  %v3988_v19 = vld [vmem:[#allocation5 + $0x22c] ss:$16 sps:$4 sm:$0xff]   ;;  %v4709_v20 = vrot.slane %v383_v16, %v4700_v49  ;;  %v3983_v23 = vld [vmem:[#allocation5 + $0x220] ss:$16 sps:$4 sm:$0xff]  }
  0x62   :  { %1736 = vmatprep.mubr.bf16.mxu0 %v404_v60  ;;  %1900 = vmatprep.mubr.bf16.mxu1 %v404_v60  ;;  %v414_v22 = vcombine.high %v404_v60, %v404_v60  ;;  %v3986_v24 = vld [vmem:[#allocation5 + $0x228] ss:$16 sps:$4 sm:$0xff]   ;;  %v3991_v25 = vld [vmem:[#allocation5 + $0x244] ss:$16 sps:$4 sm:$0xff]   ;;  %v4012_v38 = vld [vmem:[#allocation5 + $0x2ac] ss:$16 sps:$4 sm:$0xff]  }
  0x63   :  { %1717 = vmatpush1.bf16.msra.mxu0 %v3921_v26  ;;  %1881 = vmatpush1.bf16.msra.mxu1 %v3922_v27  ;;  %v3994_v26 = vld [vmem:[#allocation5 + $0x24c] ss:$16 sps:$4 sm:$0xff]   ;;  %v3989_v27 = vld [vmem:[#allocation5 + $0x240] ss:$16 sps:$4 sm:$0xff]   ;;  %v4004_v36 = vld [vmem:[#allocation5 + $0x288] ss:$16 sps:$4 sm:$0xff]  }
  0x64   :  { %1718 = vmatprep.subr.bf16.mxu0 %v3923_v28  ;;  %1882 = vmatprep.subr.bf16.mxu1 %v3925_v29  ;;  %v3992_v28 = vld [vmem:[#allocation5 + $0x248] ss:$16 sps:$4 sm:$0xff]   ;;  %v3997_v29 = vld [vmem:[#allocation5 + $0x264] ss:$16 sps:$4 sm:$0xff]   ;;  %v4018_v43 = vld [vmem:[#allocation5 + $0x2cc] ss:$16 sps:$4 sm:$0xff]  }
  0x65   :  { %v4009_v37 = vld [vmem:[#allocation5 + $0x2a4] ss:$16 sps:$4 sm:$0xff]   ;;  %v4022_v49 = vld [vmem:[#allocation5 + $0x2e8] ss:$16 sps:$4 sm:$0xff]   ;;  %v4025_v52 = vld [vmem:[#allocation5 + $0x300] ss:$16 sps:$4 sm:$0xff]  }
  0x66   :  { %v4033_v54 = vld [vmem:[#allocation5 + $0x324] ss:$16 sps:$4 sm:$0xff]   ;;  %v4037_v60 = vld [vmem:[#allocation5 + $0x340] ss:$16 sps:$4 sm:$0xff]   ;;  %v4058_v9 = vld [vmem:[#allocation5 + $0x3a8] ss:$16 sps:$4 sm:$0xff]  }
  0x67   :  { %1719 = vmatpush1.bf16.msra.mxu0 %v3927_v30  ;;  %1883 = vmatpush1.bf16.msra.mxu1 %v3928_v31  ;;  %v4000_v30 = vld [vmem:[#allocation5 + $0x26c] ss:$16 sps:$4 sm:$0xff]   ;;  %v3995_v31 = vld [vmem:[#allocation5 + $0x260] ss:$16 sps:$4 sm:$0xff]   ;;  %v4039_v58 = vld [vmem:[#allocation5 + $0x344] ss:$16 sps:$4 sm:$0xff]  }
  0x68   :  { %1720 = vmatprep.subr.bf16.mxu0 %v3929_v32  ;;  %1884 = vmatprep.subr.bf16.mxu1 %v3931_v33  ;;  %v3998_v32 = vld [vmem:[#allocation5 + $0x268] ss:$16 sps:$4 sm:$0xff]   ;;  %v4003_v33 = vld [vmem:[#allocation5 + $0x284] ss:$16 sps:$4 sm:$0xff]   ;;  %v4072_v16 = vld [vmem:[#allocation5 + $0x3ec] ss:$16 sps:$4 sm:$0xff]  }
  0x69   :  { %v4064_v13 = vld [vmem:[#allocation5 + $0x3c8] ss:$16 sps:$4 sm:$0xff]  }
  0x6b   :  { %1721 = vmatpush1.bf16.msra.mxu0 %v3933_v34  ;;  %1885 = vmatpush1.bf16.msra.mxu1 %v3934_v35  ;;  %v4006_v34 = vld [vmem:[#allocation5 + $0x28c] ss:$16 sps:$4 sm:$0xff]   ;;  %v4001_v35 = vld [vmem:[#allocation5 + $0x280] ss:$16 sps:$4 sm:$0xff]  }
  0x6c   :  { %1722 = vmatprep.subr.bf16.mxu0 %v3935_v39  ;;  %1886 = vmatprep.subr.bf16.mxu1 %v3937_v40  ;;  %v4007_v39 = vld [vmem:[#allocation5 + $0x2a0] ss:$16 sps:$4 sm:$0xff]   ;;  %v4010_v40 = vld [vmem:[#allocation5 + $0x2a8] ss:$16 sps:$4 sm:$0xff]  }
  0x6f   :  { %1723 = vmatpush1.bf16.msra.mxu0 %v3939_v41  ;;  %1887 = vmatpush1.bf16.msra.mxu1 %v3940_v44  ;;  %v4015_v41 = vld [vmem:[#allocation5 + $0x2c4] ss:$16 sps:$4 sm:$0xff]   ;;  %v4013_v44 = vld [vmem:[#allocation5 + $0x2c0] ss:$16 sps:$4 sm:$0xff]  }
  0x70   :  { %1724 = vmatprep.subr.bf16.mxu0 %v3941_v45  ;;  %1888 = vmatprep.subr.bf16.mxu1 %v3943_v46  ;;  %v4016_v45 = vld [vmem:[#allocation5 + $0x2c8] ss:$16 sps:$4 sm:$0xff]   ;;  %v4021_v46 = vld [vmem:[#allocation5 + $0x2e4] ss:$16 sps:$4 sm:$0xff]  }
  0x73   :  { %1725 = vmatpush1.bf16.msra.mxu0 %v3945_v47  ;;  %1889 = vmatpush1.bf16.msra.mxu1 %v3946_v48  ;;  %v4024_v47 = vld [vmem:[#allocation5 + $0x2ec] ss:$16 sps:$4 sm:$0xff]   ;;  %v4019_v48 = vld [vmem:[#allocation5 + $0x2e0] ss:$16 sps:$4 sm:$0xff]  }
  0x74   :  { %1726 = vmatprep.subr.bf16.mxu0 %v3947_v50  ;;  %1890 = vmatprep.subr.bf16.mxu1 %v3949_v51  ;;  %v4027_v50 = vld [vmem:[#allocation5 + $0x304] ss:$16 sps:$4 sm:$0xff]   ;;  %v4030_v51 = vld [vmem:[#allocation5 + $0x30c] ss:$16 sps:$4 sm:$0xff]  }
  0x77   :  { %1727 = vmatpush1.bf16.msra.mxu0 %v3951_v53  ;;  %1891 = vmatpush1.bf16.msra.mxu1 %v3952_v55  ;;  %v4028_v53 = vld [vmem:[#allocation5 + $0x308] ss:$16 sps:$4 sm:$0xff]   ;;  %v4036_v55 = vld [vmem:[#allocation5 + $0x32c] ss:$16 sps:$4 sm:$0xff]  }
  0x78   :  { %1728 = vmatprep.subr.bf16.mxu0 %v3953_v56  ;;  %1892 = vmatprep.subr.bf16.mxu1 %v3955_v57  ;;  %v4031_v56 = vld [vmem:[#allocation5 + $0x320] ss:$16 sps:$4 sm:$0xff]   ;;  %v4034_v57 = vld [vmem:[#allocation5 + $0x328] ss:$16 sps:$4 sm:$0xff]  }
  0x7b   :  { %1729 = vmatpush1.bf16.msra.mxu0 %v3957_v59  ;;  %1893 = vmatpush1.bf16.msra.mxu1 %v3958_v61  ;;  %v4042_v59 = vld [vmem:[#allocation5 + $0x34c] ss:$16 sps:$4 sm:$0xff]   ;;  %v4040_v61 = vld [vmem:[#allocation5 + $0x348] ss:$16 sps:$4 sm:$0xff]  }
  0x7c   :  { %1730 = vmatprep.subr.bf16.mxu0 %v3959_v62  ;;  %1894 = vmatprep.subr.bf16.mxu1 %v3961_v63  ;;  %v4045_v62 = vld [vmem:[#allocation5 + $0x364] ss:$16 sps:$4 sm:$0xff]   ;;  %v4048_v63 = vld [vmem:[#allocation5 + $0x36c] ss:$16 sps:$4 sm:$0xff]  }
  0x7f   :  { %1731 = vmatpush1.bf16.msra.mxu0 %v3963_v0  ;;  %1895 = vmatpush1.bf16.msra.mxu1 %v3964_v1  ;;  %v4043_v0 = vld [vmem:[#allocation5 + $0x360] ss:$16 sps:$4 sm:$0xff]   ;;  %v4046_v1 = vld [vmem:[#allocation5 + $0x368] ss:$16 sps:$4 sm:$0xff]  }
  0x80   :  { %1732 = vmatprep.subr.bf16.mxu0 %v3965_v2  ;;  %1896 = vmatprep.subr.bf16.mxu1 %v3967_v3  ;;  %v4051_v2 = vld [vmem:[#allocation5 + $0x384] ss:$16 sps:$4 sm:$0xff]   ;;  %v4054_v3 = vld [vmem:[#allocation5 + $0x38c] ss:$16 sps:$4 sm:$0xff]  }
  0x83   :  { %1733 = vmatpush1.bf16.msra.mxu0 %v3969_v4  ;;  %1897 = vmatpush1.bf16.msra.mxu1 %v3970_v5  ;;  %v4049_v4 = vld [vmem:[#allocation5 + $0x380] ss:$16 sps:$4 sm:$0xff]   ;;  %v4052_v5 = vld [vmem:[#allocation5 + $0x388] ss:$16 sps:$4 sm:$0xff]  }
  0x84   :  { %1734 = vmatprep.subr.bf16.mxu0 %v3971_v6  ;;  %1898 = vmatprep.subr.bf16.mxu1 %v3973_v7  ;;  %v4057_v6 = vld [vmem:[#allocation5 + $0x3a4] ss:$16 sps:$4 sm:$0xff]   ;;  %v4060_v7 = vld [vmem:[#allocation5 + $0x3ac] ss:$16 sps:$4 sm:$0xff]  }
  0x87   :  { %1735 = vmatpush1.bf16.msra.mxu0 %v3975_v8  ;;  %1899 = vmatpush1.bf16.msra.mxu1 %v3976_v10  ;;  %v4055_v8 = vld [vmem:[#allocation5 + $0x3a0] ss:$16 sps:$4 sm:$0xff]   ;;  %v4063_v10 = vld [vmem:[#allocation5 + $0x3c4] ss:$16 sps:$4 sm:$0xff]  }
  0x88   :  { %1745 = vmatprep.subr.bf16.mxu0 %v3979_v11  ;;  %1909 = vmatprep.subr.bf16.mxu1 %v3982_v12  ;;  %v4066_v11 = vld [vmem:[#allocation5 + $0x3cc] ss:$16 sps:$4 sm:$0xff]   ;;  %v4061_v12 = vld [vmem:[#allocation5 + $0x3c0] ss:$16 sps:$4 sm:$0xff]  }
  0x8a   :  { %1737 = vmatmul.mubr.bf16.vlgmr.msra.gmra.mrb[0].mxu0 %v4706_v15  ;;  %1901 = vmatmul.mubr.bf16.vlgmr.msra.gmra.mrb[0].mxu1 %v4706_v15 }
  0x8b   :  { %1746 = vmatpush1.bf16.msra.mxu0 %v3977_v14  ;;  %1910 = vmatpush1.bf16.msra.mxu1 %v3980_v17  ;;  %v4069_v14 = vld [vmem:[#allocation5 + $0x3e4] ss:$16 sps:$4 sm:$0xff]   ;;  %v4067_v17 = vld [vmem:[#allocation5 + $0x3e0] ss:$16 sps:$4 sm:$0xff]  }
  0x8c   :  { %1747 = vmatprep.subr.bf16.mxu0 %v3985_v18  ;;  %1911 = vmatprep.subr.bf16.mxu1 %v3988_v19  ;;  %v4070_v18 = vld [vmem:[#allocation5 + $0x3e8] ss:$16 sps:$4 sm:$0xff]   ;;  %v4075_v19 = vld [vmem:[#allocation5 + $0x404] ss:$16 sps:$4 sm:$0xff]  }
  0x8d   :  { %1777 = vmatprep.mubr.bf16.mxu0 %v414_v22  ;;  %1941 = vmatprep.mubr.bf16.mxu1 %v414_v22  ;;  %v4078_v22 = vld [vmem:[#allocation5 + $0x40c] ss:$16 sps:$4 sm:$0xff]  }
  0x8f   :  { %1748 = vmatpush1.bf16.msra.mxu0 %v3983_v23  ;;  %1912 = vmatpush1.bf16.msra.mxu1 %v3986_v24  ;;  %v4073_v23 = vld [vmem:[#allocation5 + $0x400] ss:$16 sps:$4 sm:$0xff]   ;;  %v412_v24 = vcombine.high %v4706_v15, %v4706_v15 }
  0x90   :  { %1749 = vmatprep.subr.bf16.mxu0 %v3991_v25  ;;  %1913 = vmatprep.subr.bf16.mxu1 %v3994_v26  ;;  %v4076_v25 = vld [vmem:[#allocation5 + $0x408] ss:$16 sps:$4 sm:$0xff]   ;;  %v4081_v26 = vld [vmem:[#allocation5 + $0x424] ss:$16 sps:$4 sm:$0xff]   ;;  %v4085_v15 = vld [vmem:[#allocation5 + $0x440] ss:$16 sps:$4 sm:$0xff]  }
  0x93   :  { %1750 = vmatpush1.bf16.msra.mxu0 %v3989_v27  ;;  %1914 = vmatpush1.bf16.msra.mxu1 %v3992_v28  ;;  %v4084_v27 = vld [vmem:[#allocation5 + $0x42c] ss:$16 sps:$4 sm:$0xff]   ;;  %v4079_v28 = vld [vmem:[#allocation5 + $0x420] ss:$16 sps:$4 sm:$0xff]  }
  0x94   :  { %1751 = vmatprep.subr.bf16.mxu0 %v3997_v29  ;;  %1915 = vmatprep.subr.bf16.mxu1 %v4000_v30  ;;  %v4082_v29 = vld [vmem:[#allocation5 + $0x428] ss:$16 sps:$4 sm:$0xff]   ;;  %v4087_v30 = vld [vmem:[#allocation5 + $0x444] ss:$16 sps:$4 sm:$0xff]  }
  0x97   :  { %1752 = vmatpush1.bf16.msra.mxu0 %v3995_v31  ;;  %1916 = vmatpush1.bf16.msra.mxu1 %v3998_v32  ;;  %v4090_v31 = vld [vmem:[#allocation5 + $0x44c] ss:$16 sps:$4 sm:$0xff]   ;;  %v4088_v32 = vld [vmem:[#allocation5 + $0x448] ss:$16 sps:$4 sm:$0xff]  }
  0x98   :  { %1753 = vmatprep.subr.bf16.mxu0 %v4003_v33  ;;  %1917 = vmatprep.subr.bf16.mxu1 %v4006_v34  ;;  %v4093_v33 = vld [vmem:[#allocation5 + $0x464] ss:$16 sps:$4 sm:$0xff]   ;;  %v4096_v34 = vld [vmem:[#allocation5 + $0x46c] ss:$16 sps:$4 sm:$0xff]  }
  0x9b   :  { %1754 = vmatpush1.bf16.msra.mxu0 %v4001_v35  ;;  %1918 = vmatpush1.bf16.msra.mxu1 %v4004_v36  ;;  %v4091_v35 = vld [vmem:[#allocation5 + $0x460] ss:$16 sps:$4 sm:$0xff]   ;;  %v4094_v36 = vld [vmem:[#allocation5 + $0x468] ss:$16 sps:$4 sm:$0xff]  }
  0x9c   :  { %1755 = vmatprep.subr.bf16.mxu0 %v4009_v37  ;;  %1919 = vmatprep.subr.bf16.mxu1 %v4012_v38  ;;  %v4099_v37 = vld [vmem:[#allocation5 + $0x484] ss:$16 sps:$4 sm:$0xff]   ;;  %v4102_v38 = vld [vmem:[#allocation5 + $0x48c] ss:$16 sps:$4 sm:$0xff]  }
  0x9f   :  { %1756 = vmatpush1.bf16.msra.mxu0 %v4007_v39  ;;  %1920 = vmatpush1.bf16.msra.mxu1 %v4010_v40  ;;  %v4097_v39 = vld [vmem:[#allocation5 + $0x480] ss:$16 sps:$4 sm:$0xff]   ;;  %v4100_v40 = vld [vmem:[#allocation5 + $0x488] ss:$16 sps:$4 sm:$0xff]  }
  0xa0   :  { %1757 = vmatprep.subr.bf16.mxu0 %v4015_v41  ;;  %1921 = vmatprep.subr.bf16.mxu1 %v4018_v43  ;;  %v4105_v41 = vld [vmem:[#allocation5 + $0x4a4] ss:$16 sps:$4 sm:$0xff]   ;;  %v4108_v43 = vld [vmem:[#allocation5 + $0x4ac] ss:$16 sps:$4 sm:$0xff]  }
  0xa3   :  { %1758 = vmatpush1.bf16.msra.mxu0 %v4013_v44  ;;  %1922 = vmatpush1.bf16.msra.mxu1 %v4016_v45  ;;  %v4103_v44 = vld [vmem:[#allocation5 + $0x4a0] ss:$16 sps:$4 sm:$0xff]   ;;  %v4106_v45 = vld [vmem:[#allocation5 + $0x4a8] ss:$16 sps:$4 sm:$0xff]  }
  0xa4   :  { %1759 = vmatprep.subr.bf16.mxu0 %v4021_v46  ;;  %1923 = vmatprep.subr.bf16.mxu1 %v4024_v47  ;;  %v4111_v46 = vld [vmem:[#allocation5 + $0x4c4] ss:$16 sps:$4 sm:$0xff]   ;;  %v4114_v47 = vld [vmem:[#allocation5 + $0x4cc] ss:$16 sps:$4 sm:$0xff]  }
  0xa7   :  { %1760 = vmatpush1.bf16.msra.mxu0 %v4019_v48  ;;  %1924 = vmatpush1.bf16.msra.mxu1 %v4022_v49  ;;  %v4109_v48 = vld [vmem:[#allocation5 + $0x4c0] ss:$16 sps:$4 sm:$0xff]   ;;  %v4112_v49 = vld [vmem:[#allocation5 + $0x4c8] ss:$16 sps:$4 sm:$0xff]  }
  0xa8   :  { %1761 = vmatprep.subr.bf16.mxu0 %v4027_v50  ;;  %1925 = vmatprep.subr.bf16.mxu1 %v4030_v51  ;;  %v4117_v50 = vld [vmem:[#allocation5 + $0x4e4] ss:$16 sps:$4 sm:$0xff]   ;;  %v4120_v51 = vld [vmem:[#allocation5 + $0x4ec] ss:$16 sps:$4 sm:$0xff]  }
  0xab   :  { %1762 = vmatpush1.bf16.msra.mxu0 %v4025_v52  ;;  %1926 = vmatpush1.bf16.msra.mxu1 %v4028_v53  ;;  %v4115_v52 = vld [vmem:[#allocation5 + $0x4e0] ss:$16 sps:$4 sm:$0xff]   ;;  %v4118_v53 = vld [vmem:[#allocation5 + $0x4e8] ss:$16 sps:$4 sm:$0xff]  }
  0xac   :  { %1763 = vmatprep.subr.bf16.mxu0 %v4033_v54  ;;  %1927 = vmatprep.subr.bf16.mxu1 %v4036_v55  ;;  %v4123_v54 = vld [vmem:[#allocation5 + $0x504] ss:$16 sps:$4 sm:$0xff]   ;;  %v4126_v55 = vld [vmem:[#allocation5 + $0x50c] ss:$16 sps:$4 sm:$0xff]  }
  0xaf   :  { %1764 = vmatpush1.bf16.msra.mxu0 %v4031_v56  ;;  %1928 = vmatpush1.bf16.msra.mxu1 %v4034_v57  ;;  %v4121_v56 = vld [vmem:[#allocation5 + $0x500] ss:$16 sps:$4 sm:$0xff]   ;;  %v4124_v57 = vld [vmem:[#allocation5 + $0x508] ss:$16 sps:$4 sm:$0xff]  }
  0xb0   :  { %1765 = vmatprep.subr.bf16.mxu0 %v4039_v58  ;;  %1929 = vmatprep.subr.bf16.mxu1 %v4042_v59  ;;  %v4129_v58 = vld [vmem:[#allocation5 + $0x524] ss:$16 sps:$4 sm:$0xff]   ;;  %v4132_v59 = vld [vmem:[#allocation5 + $0x52c] ss:$16 sps:$4 sm:$0xff]  }
  0xb3   :  { %1766 = vmatpush1.bf16.msra.mxu0 %v4037_v60  ;;  %1930 = vmatpush1.bf16.msra.mxu1 %v4040_v61  ;;  %v4127_v60 = vld [vmem:[#allocation5 + $0x520] ss:$16 sps:$4 sm:$0xff]   ;;  %v4130_v61 = vld [vmem:[#allocation5 + $0x528] ss:$16 sps:$4 sm:$0xff]  }
  0xb4   :  { %1767 = vmatprep.subr.bf16.mxu0 %v4045_v62  ;;  %1931 = vmatprep.subr.bf16.mxu1 %v4048_v63  ;;  %v4135_v62 = vld [vmem:[#allocation5 + $0x544] ss:$16 sps:$4 sm:$0xff]   ;;  %v4138_v63 = vld [vmem:[#allocation5 + $0x54c] ss:$16 sps:$4 sm:$0xff]  }
  0xb7   :  { %1768 = vmatpush1.bf16.msra.mxu0 %v4043_v0  ;;  %1932 = vmatpush1.bf16.msra.mxu1 %v4046_v1  ;;  %v4133_v0 = vld [vmem:[#allocation5 + $0x540] ss:$16 sps:$4 sm:$0xff]   ;;  %v4136_v1 = vld [vmem:[#allocation5 + $0x548] ss:$16 sps:$4 sm:$0xff]  }
  0xb8   :  { %1769 = vmatprep.subr.bf16.mxu0 %v4051_v2  ;;  %1933 = vmatprep.subr.bf16.mxu1 %v4054_v3  ;;  %v4141_v2 = vld [vmem:[#allocation5 + $0x564] ss:$16 sps:$4 sm:$0xff]   ;;  %v4144_v3 = vld [vmem:[#allocation5 + $0x56c] ss:$16 sps:$4 sm:$0xff]  }
  0xbb   :  { %1770 = vmatpush1.bf16.msra.mxu0 %v4049_v4  ;;  %1934 = vmatpush1.bf16.msra.mxu1 %v4052_v5  ;;  %v4139_v4 = vld [vmem:[#allocation5 + $0x560] ss:$16 sps:$4 sm:$0xff]   ;;  %v4142_v5 = vld [vmem:[#allocation5 + $0x568] ss:$16 sps:$4 sm:$0xff]  }
  0xbc   :  { %1771 = vmatprep.subr.bf16.mxu0 %v4057_v6  ;;  %1935 = vmatprep.subr.bf16.mxu1 %v4060_v7  ;;  %v4147_v6 = vld [vmem:[#allocation5 + $0x584] ss:$16 sps:$4 sm:$0xff]   ;;  %v4150_v7 = vld [vmem:[#allocation5 + $0x58c] ss:$16 sps:$4 sm:$0xff]  }
  0xbf   :  { %1772 = vmatpush1.bf16.msra.mxu0 %v4055_v8  ;;  %1936 = vmatpush1.bf16.msra.mxu1 %v4058_v9  ;;  %v4145_v8 = vld [vmem:[#allocation5 + $0x580] ss:$16 sps:$4 sm:$0xff]   ;;  %v4148_v9 = vld [vmem:[#allocation5 + $0x588] ss:$16 sps:$4 sm:$0xff]  }
  0xc0   :  { %1773 = vmatprep.subr.bf16.mxu0 %v4063_v10  ;;  %1937 = vmatprep.subr.bf16.mxu1 %v4066_v11  ;;  %v4153_v10 = vld [vmem:[#allocation5 + $0x5a4] ss:$16 sps:$4 sm:$0xff]   ;;  %v4156_v11 = vld [vmem:[#allocation5 + $0x5ac] ss:$16 sps:$4 sm:$0xff]  }
  0xc3   :  { %1774 = vmatpush1.bf16.msra.mxu0 %v4061_v12  ;;  %1938 = vmatpush1.bf16.msra.mxu1 %v4064_v13  ;;  %v4151_v12 = vld [vmem:[#allocation5 + $0x5a0] ss:$16 sps:$4 sm:$0xff]   ;;  %v4154_v13 = vld [vmem:[#allocation5 + $0x5a8] ss:$16 sps:$4 sm:$0xff]  }
  0xc4   :  { %1775 = vmatprep.subr.bf16.mxu0 %v4069_v14  ;;  %1939 = vmatprep.subr.bf16.mxu1 %v4072_v16  ;;  %v4159_v14 = vld [vmem:[#allocation5 + $0x5c4] ss:$16 sps:$4 sm:$0xff]   ;;  %v4162_v16 = vld [vmem:[#allocation5 + $0x5cc] ss:$16 sps:$4 sm:$0xff]  }
  0xc7   :  { %1776 = vmatpush1.bf16.msra.mxu0 %v4067_v17  ;;  %1940 = vmatpush1.bf16.msra.mxu1 %v4070_v18  ;;  %v4157_v17 = vld [vmem:[#allocation5 + $0x5c0] ss:$16 sps:$4 sm:$0xff]   ;;  %v4160_v18 = vld [vmem:[#allocation5 + $0x5c8] ss:$16 sps:$4 sm:$0xff]  }
  0xc8   :  { %1786 = vmatprep.subr.bf16.mxu0 %v4075_v19  ;;  %1950 = vmatprep.subr.bf16.mxu1 %v4078_v22  ;;  %v4165_v19 = vld [vmem:[#allocation5 + $0x5e4] ss:$16 sps:$4 sm:$0xff]   ;;  %v4168_v22 = vld [vmem:[#allocation5 + $0x5ec] ss:$16 sps:$4 sm:$0xff]  }
  0xca   :  { %1778 = vmatmul.mubr.bf16.vlgmr.msra.gmra.mrb[0].mxu0 %v412_v24  ;;  %1942 = vmatmul.mubr.bf16.vlgmr.msra.gmra.mrb[0].mxu1 %v412_v24  ;;  %v4166_v24 = vld [vmem:[#allocation5 + $0x5e8] ss:$16 sps:$4 sm:$0xff]  }
  0xcb   :  { %1787 = vmatpush1.bf16.msra.mxu0 %v4073_v23  ;;  %1951 = vmatpush1.bf16.msra.mxu1 %v4076_v25  ;;  %v4163_v23 = vld [vmem:[#allocation5 + $0x5e0] ss:$16 sps:$4 sm:$0xff]   ;;  %v4172_v25 = vld [vmem:[#allocation5 + $0x604] ss:$16 sps:$4 sm:$0xff]  }
  0xcc   :  { %1788 = vmatprep.subr.bf16.mxu0 %v4081_v26  ;;  %1952 = vmatprep.subr.bf16.mxu1 %v4084_v27  ;;  %v4175_v26 = vld [vmem:[#allocation5 + $0x60c] ss:$16 sps:$4 sm:$0xff]   ;;  %v4170_v27 = vld [vmem:[#allocation5 + $0x600] ss:$16 sps:$4 sm:$0xff]  }
  0xcd   :  { %1818 = vmatprep.mubr.bf16.mxu0 %v4709_v20  ;;  %1982 = vmatprep.mubr.bf16.mxu1 %v4709_v20 }
  0xcf   :  { %1789 = vmatpush1.bf16.msra.mxu0 %v4079_v28  ;;  %1953 = vmatpush1.bf16.msra.mxu1 %v4082_v29  ;;  %v4173_v28 = vld [vmem:[#allocation5 + $0x608] ss:$16 sps:$4 sm:$0xff]   ;;  %v4178_v29 = vld [vmem:[#allocation5 + $0x624] ss:$16 sps:$4 sm:$0xff]  }
  0xd0   :  { %1790 = vmatprep.subr.bf16.mxu0 %v4087_v30  ;;  %1954 = vmatprep.subr.bf16.mxu1 %v4090_v31  ;;  %v4181_v30 = vld [vmem:[#allocation5 + $0x62c] ss:$16 sps:$4 sm:$0xff]   ;;  %v415_v31 = vcombine.high %v4709_v20, %v4709_v20  ;;  %v4190_v20 = vld [vmem:[#allocation5 + $0x664] ss:$16 sps:$4 sm:$0xff]  }
  0xd3   :  { %1791 = vmatpush1.bf16.msra.mxu0 %v4085_v15  ;;  %1955 = vmatpush1.bf16.msra.mxu1 %v4088_v32  ;;  %v4176_v15 = vld [vmem:[#allocation5 + $0x620] ss:$16 sps:$4 sm:$0xff]   ;;  %v4179_v32 = vld [vmem:[#allocation5 + $0x628] ss:$16 sps:$4 sm:$0xff]  }
  0xd4   :  { %1792 = vmatprep.subr.bf16.mxu0 %v4093_v33  ;;  %1956 = vmatprep.subr.bf16.mxu1 %v4096_v34  ;;  %v4184_v33 = vld [vmem:[#allocation5 + $0x644] ss:$16 sps:$4 sm:$0xff]   ;;  %v4187_v34 = vld [vmem:[#allocation5 + $0x64c] ss:$16 sps:$4 sm:$0xff]  }
  0xd7   :  { %1793 = vmatpush1.bf16.msra.mxu0 %v4091_v35  ;;  %1957 = vmatpush1.bf16.msra.mxu1 %v4094_v36  ;;  %v4182_v35 = vld [vmem:[#allocation5 + $0x640] ss:$16 sps:$4 sm:$0xff]   ;;  %v4185_v36 = vld [vmem:[#allocation5 + $0x648] ss:$16 sps:$4 sm:$0xff]  }
  0xd8   :  { %1794 = vmatprep.subr.bf16.mxu0 %v4099_v37  ;;  %1958 = vmatprep.subr.bf16.mxu1 %v4102_v38  ;;  %v4193_v37 = vld [vmem:[#allocation5 + $0x66c] ss:$16 sps:$4 sm:$0xff]   ;;  %v4188_v38 = vld [vmem:[#allocation5 + $0x660] ss:$16 sps:$4 sm:$0xff]  }
  0xdb   :  { %1795 = vmatpush1.bf16.msra.mxu0 %v4097_v39  ;;  %1959 = vmatpush1.bf16.msra.mxu1 %v4100_v40  ;;  %v4191_v39 = vld [vmem:[#allocation5 + $0x668] ss:$16 sps:$4 sm:$0xff]   ;;  %v4196_v40 = vld [vmem:[#allocation5 + $0x684] ss:$16 sps:$4 sm:$0xff]  }
  0xdc   :  { %1796 = vmatprep.subr.bf16.mxu0 %v4105_v41  ;;  %1960 = vmatprep.subr.bf16.mxu1 %v4108_v43  ;;  %v4199_v41 = vld [vmem:[#allocation5 + $0x68c] ss:$16 sps:$4 sm:$0xff]   ;;  %v4194_v43 = vld [vmem:[#allocation5 + $0x680] ss:$16 sps:$4 sm:$0xff]  }
  0xdf   :  { %1797 = vmatpush1.bf16.msra.mxu0 %v4103_v44  ;;  %1961 = vmatpush1.bf16.msra.mxu1 %v4106_v45  ;;  %v4197_v44 = vld [vmem:[#allocation5 + $0x688] ss:$16 sps:$4 sm:$0xff]   ;;  %v4202_v45 = vld [vmem:[#allocation5 + $0x6a4] ss:$16 sps:$4 sm:$0xff]  }
  0xe0   :  { %1798 = vmatprep.subr.bf16.mxu0 %v4111_v46  ;;  %1962 = vmatprep.subr.bf16.mxu1 %v4114_v47  ;;  %v4205_v46 = vld [vmem:[#allocation5 + $0x6ac] ss:$16 sps:$4 sm:$0xff]   ;;  %v4200_v47 = vld [vmem:[#allocation5 + $0x6a0] ss:$16 sps:$4 sm:$0xff]  }
  0xe3   :  { %1799 = vmatpush1.bf16.msra.mxu0 %v4109_v48  ;;  %1963 = vmatpush1.bf16.msra.mxu1 %v4112_v49  ;;  %v4203_v48 = vld [vmem:[#allocation5 + $0x6a8] ss:$16 sps:$4 sm:$0xff]   ;;  %v4208_v49 = vld [vmem:[#allocation5 + $0x6c4] ss:$16 sps:$4 sm:$0xff]  }
  0xe4   :  { %1800 = vmatprep.subr.bf16.mxu0 %v4117_v50  ;;  %1964 = vmatprep.subr.bf16.mxu1 %v4120_v51  ;;  %v4211_v50 = vld [vmem:[#allocation5 + $0x6cc] ss:$16 sps:$4 sm:$0xff]   ;;  %v4206_v51 = vld [vmem:[#allocation5 + $0x6c0] ss:$16 sps:$4 sm:$0xff]  }
  0xe7   :  { %1801 = vmatpush1.bf16.msra.mxu0 %v4115_v52  ;;  %1965 = vmatpush1.bf16.msra.mxu1 %v4118_v53  ;;  %v4209_v52 = vld [vmem:[#allocation5 + $0x6c8] ss:$16 sps:$4 sm:$0xff]   ;;  %v4214_v53 = vld [vmem:[#allocation5 + $0x6e4] ss:$16 sps:$4 sm:$0xff]  }
  0xe8   :  { %1802 = vmatprep.subr.bf16.mxu0 %v4123_v54  ;;  %1966 = vmatprep.subr.bf16.mxu1 %v4126_v55  ;;  %v4217_v54 = vld [vmem:[#allocation5 + $0x6ec] ss:$16 sps:$4 sm:$0xff]   ;;  %v4212_v55 = vld [vmem:[#allocation5 + $0x6e0] ss:$16 sps:$4 sm:$0xff]  }
  0xeb   :  { %1803 = vmatpush1.bf16.msra.mxu0 %v4121_v56  ;;  %1967 = vmatpush1.bf16.msra.mxu1 %v4124_v57  ;;  %v4215_v56 = vld [vmem:[#allocation5 + $0x6e8] ss:$16 sps:$4 sm:$0xff]   ;;  %v4220_v57 = vld [vmem:[#allocation5 + $0x704] ss:$16 sps:$4 sm:$0xff]  }
  0xec   :  { %1804 = vmatprep.subr.bf16.mxu0 %v4129_v58  ;;  %1968 = vmatprep.subr.bf16.mxu1 %v4132_v59  ;;  %v4223_v58 = vld [vmem:[#allocation5 + $0x70c] ss:$16 sps:$4 sm:$0xff]   ;;  %v4218_v59 = vld [vmem:[#allocation5 + $0x700] ss:$16 sps:$4 sm:$0xff]  }
  0xef   :  { %1805 = vmatpush1.bf16.msra.mxu0 %v4127_v60  ;;  %1969 = vmatpush1.bf16.msra.mxu1 %v4130_v61  ;;  %v4221_v60 = vld [vmem:[#allocation5 + $0x708] ss:$16 sps:$4 sm:$0xff]   ;;  %v4226_v61 = vld [vmem:[#allocation5 + $0x724] ss:$16 sps:$4 sm:$0xff]  }
  0xf0   :  { %1806 = vmatprep.subr.bf16.mxu0 %v4135_v62  ;;  %1970 = vmatprep.subr.bf16.mxu1 %v4138_v63  ;;  %v4229_v62 = vld [vmem:[#allocation5 + $0x72c] ss:$16 sps:$4 sm:$0xff]   ;;  %v4224_v63 = vld [vmem:[#allocation5 + $0x720] ss:$16 sps:$4 sm:$0xff]  }
  0xf3   :  { %1807 = vmatpush1.bf16.msra.mxu0 %v4133_v0  ;;  %1971 = vmatpush1.bf16.msra.mxu1 %v4136_v1  ;;  %v4227_v0 = vld [vmem:[#allocation5 + $0x728] ss:$16 sps:$4 sm:$0xff]   ;;  %v4232_v1 = vld [vmem:[#allocation5 + $0x744] ss:$16 sps:$4 sm:$0xff]  }
  0xf4   :  { %1808 = vmatprep.subr.bf16.mxu0 %v4141_v2  ;;  %1972 = vmatprep.subr.bf16.mxu1 %v4144_v3  ;;  %v4235_v2 = vld [vmem:[#allocation5 + $0x74c] ss:$16 sps:$4 sm:$0xff]   ;;  %v4230_v3 = vld [vmem:[#allocation5 + $0x740] ss:$16 sps:$4 sm:$0xff]  }
  0xf7   :  { %1809 = vmatpush1.bf16.msra.mxu0 %v4139_v4  ;;  %1973 = vmatpush1.bf16.msra.mxu1 %v4142_v5  ;;  %v4233_v4 = vld [vmem:[#allocation5 + $0x748] ss:$16 sps:$4 sm:$0xff]   ;;  %v4238_v5 = vld [vmem:[#allocation5 + $0x764] ss:$16 sps:$4 sm:$0xff]  }
  0xf8   :  { %1810 = vmatprep.subr.bf16.mxu0 %v4147_v6  ;;  %1974 = vmatprep.subr.bf16.mxu1 %v4150_v7  ;;  %v4241_v6 = vld [vmem:[#allocation5 + $0x76c] ss:$16 sps:$4 sm:$0xff]   ;;  %v4236_v7 = vld [vmem:[#allocation5 + $0x760] ss:$16 sps:$4 sm:$0xff]  }
  0xfb   :  { %1811 = vmatpush1.bf16.msra.mxu0 %v4145_v8  ;;  %1975 = vmatpush1.bf16.msra.mxu1 %v4148_v9  ;;  %v4239_v8 = vld [vmem:[#allocation5 + $0x768] ss:$16 sps:$4 sm:$0xff]   ;;  %v4244_v9 = vld [vmem:[#allocation5 + $0x784] ss:$16 sps:$4 sm:$0xff]  }
  0xfc   :  { %1812 = vmatprep.subr.bf16.mxu0 %v4153_v10  ;;  %1976 = vmatprep.subr.bf16.mxu1 %v4156_v11  ;;  %v4247_v10 = vld [vmem:[#allocation5 + $0x78c] ss:$16 sps:$4 sm:$0xff]   ;;  %v4242_v11 = vld [vmem:[#allocation5 + $0x780] ss:$16 sps:$4 sm:$0xff]  }
  0xff   :  { %1813 = vmatpush1.bf16.msra.mxu0 %v4151_v12  ;;  %1977 = vmatpush1.bf16.msra.mxu1 %v4154_v13  ;;  %v4245_v12 = vld [vmem:[#allocation5 + $0x788] ss:$16 sps:$4 sm:$0xff]   ;;  %v4250_v13 = vld [vmem:[#allocation5 + $0x7a4] ss:$16 sps:$4 sm:$0xff]  }
 0x100   :  { %1814 = vmatprep.subr.bf16.mxu0 %v4159_v14  ;;  %1978 = vmatprep.subr.bf16.mxu1 %v4162_v16  ;;  %v4253_v14 = vld [vmem:[#allocation5 + $0x7ac] ss:$16 sps:$4 sm:$0xff]   ;;  %v4248_v16 = vld [vmem:[#allocation5 + $0x7a0] ss:$16 sps:$4 sm:$0xff]  }
 0x103   :  { %1815 = vmatpush1.bf16.msra.mxu0 %v4157_v17  ;;  %1979 = vmatpush1.bf16.msra.mxu1 %v4160_v18  ;;  %v4251_v17 = vld [vmem:[#allocation5 + $0x7a8] ss:$16 sps:$4 sm:$0xff]   ;;  %v4256_v18 = vld [vmem:[#allocation5 + $0x7c4] ss:$16 sps:$4 sm:$0xff]  }
 0x104   :  { %1816 = vmatprep.subr.bf16.mxu0 %v4165_v19  ;;  %1980 = vmatprep.subr.bf16.mxu1 %v4168_v22  ;;  %v4259_v19 = vld [vmem:[#allocation5 + $0x7cc] ss:$16 sps:$4 sm:$0xff]   ;;  %v4254_v22 = vld [vmem:[#allocation5 + $0x7c0] ss:$16 sps:$4 sm:$0xff]  }
 0x107   :  { %1817 = vmatpush1.bf16.msra.mxu0 %v4163_v23  ;;  %1981 = vmatpush1.bf16.msra.mxu1 %v4166_v24  ;;  %v4257_v23 = vld [vmem:[#allocation5 + $0x7c8] ss:$16 sps:$4 sm:$0xff]   ;;  %v4262_v24 = vld [vmem:[#allocation5 + $0x7e4] ss:$16 sps:$4 sm:$0xff]  }
 0x108   :  { %1827 = vmatprep.subr.bf16.mxu0 %v4172_v25  ;;  %1991 = vmatprep.subr.bf16.mxu1 %v4175_v26  ;;  %v4265_v25 = vld [vmem:[#allocation5 + $0x7ec] ss:$16 sps:$4 sm:$0xff]   ;;  %v4260_v26 = vld [vmem:[#allocation5 + $0x7e0] ss:$16 sps:$4 sm:$0xff]  }
 0x10a   :  { %1819 = vmatmul.mubr.bf16.vlgmr.msra.gmra.mrb[0].mxu0 %v4712_v21  ;;  %1983 = vmatmul.mubr.bf16.vlgmr.msra.gmra.mrb[0].mxu1 %v4712_v21 }
 0x10b   :  { %1828 = vmatpush1.bf16.msra.mxu0 %v4170_v27  ;;  %1992 = vmatpush1.bf16.msra.mxu1 %v4173_v28  ;;  %v4263_v27 = vld [vmem:[#allocation5 + $0x7e8] ss:$16 sps:$4 sm:$0xff]   ;;  %v4268_v28 = vld [vmem:[#allocation7 + $0x4] ss:$16 sps:$4 sm:$0xff]  }
 0x10c   :  { %1829 = vmatprep.subr.bf16.mxu0 %v4178_v29  ;;  %1993 = vmatprep.subr.bf16.mxu1 %v4181_v30  ;;  %v4271_v29 = vld [vmem:[#allocation7 + $0xc] ss:$16 sps:$4 sm:$0xff]   ;;  %v413_v30 = vcombine.high %v4712_v21, %v4712_v21  ;;  %v4278_v21 = vld [vmem:[#allocation7 + $0x40] ss:$16 sps:$4 sm:$0xff]  }
 0x10d   :  { %1859 = vmatprep.mubr.bf16.mxu0 %v415_v31  ;;  %2023 = vmatprep.mubr.bf16.mxu1 %v415_v31  ;;  %v4266_v31 = vld [vmem:[#allocation7] ss:$16 sps:$4 sm:$0xff]  }
 0x10f   :  { %1830 = vmatpush1.bf16.msra.mxu0 %v4176_v15  ;;  %1994 = vmatpush1.bf16.msra.mxu1 %v4179_v32  ;;  %v4269_v15 = vld [vmem:[#allocation7 + $0x8] ss:$16 sps:$4 sm:$0xff]   ;;  %v4274_v32 = vld [vmem:[#allocation7 + $0x24] ss:$16 sps:$4 sm:$0xff]  }
 0x110   :  { %1831 = vmatprep.subr.bf16.mxu0 %v4184_v33  ;;  %1995 = vmatprep.subr.bf16.mxu1 %v4187_v34  ;;  %v4277_v33 = vld [vmem:[#allocation7 + $0x2c] ss:$16 sps:$4 sm:$0xff]   ;;  %v4272_v34 = vld [vmem:[#allocation7 + $0x20] ss:$16 sps:$4 sm:$0xff]  }
 0x113   :  { %1832 = vmatpush1.bf16.msra.mxu0 %v4182_v35  ;;  %1996 = vmatpush1.bf16.msra.mxu1 %v4185_v36  ;;  %v4275_v35 = vld [vmem:[#allocation7 + $0x28] ss:$16 sps:$4 sm:$0xff]   ;;  %v4280_v36 = vld [vmem:[#allocation7 + $0x44] ss:$16 sps:$4 sm:$0xff]  }
 0x114   :  { %1833 = vmatprep.subr.bf16.mxu0 %v4190_v20  ;;  %1997 = vmatprep.subr.bf16.mxu1 %v4193_v37  ;;  %v4283_v20 = vld [vmem:[#allocation7 + $0x4c] ss:$16 sps:$4 sm:$0xff]   ;;  %v4281_v37 = vld [vmem:[#allocation7 + $0x48] ss:$16 sps:$4 sm:$0xff]  }
 0x117   :  { %1834 = vmatpush1.bf16.msra.mxu0 %v4188_v38  ;;  %1998 = vmatpush1.bf16.msra.mxu1 %v4191_v39  ;;  %v4286_v38 = vld [vmem:[#allocation7 + $0x64] ss:$16 sps:$4 sm:$0xff]   ;;  %v4289_v39 = vld [vmem:[#allocation7 + $0x6c] ss:$16 sps:$4 sm:$0xff]  }
 0x118   :  { %1835 = vmatprep.subr.bf16.mxu0 %v4196_v40  ;;  %1999 = vmatprep.subr.bf16.mxu1 %v4199_v41  ;;  %v4284_v40 = vld [vmem:[#allocation7 + $0x60] ss:$16 sps:$4 sm:$0xff]   ;;  %v4287_v41 = vld [vmem:[#allocation7 + $0x68] ss:$16 sps:$4 sm:$0xff]  }
 0x11b   :  { %1836 = vmatpush1.bf16.msra.mxu0 %v4194_v43  ;;  %2000 = vmatpush1.bf16.msra.mxu1 %v4197_v44  ;;  %v4292_v43 = vld [vmem:[#allocation7 + $0x84] ss:$16 sps:$4 sm:$0xff]   ;;  %v4295_v44 = vld [vmem:[#allocation7 + $0x8c] ss:$16 sps:$4 sm:$0xff]  }
 0x11c   :  { %1837 = vmatprep.subr.bf16.mxu0 %v4202_v45  ;;  %2001 = vmatprep.subr.bf16.mxu1 %v4205_v46  ;;  %v4290_v45 = vld [vmem:[#allocation7 + $0x80] ss:$16 sps:$4 sm:$0xff]   ;;  %v4293_v46 = vld [vmem:[#allocation7 + $0x88] ss:$16 sps:$4 sm:$0xff]  }
 0x11f   :  { %1838 = vmatpush1.bf16.msra.mxu0 %v4200_v47  ;;  %2002 = vmatpush1.bf16.msra.mxu1 %v4203_v48  ;;  %v4298_v47 = vld [vmem:[#allocation7 + $0xa4] ss:$16 sps:$4 sm:$0xff]   ;;  %v4301_v48 = vld [vmem:[#allocation7 + $0xac] ss:$16 sps:$4 sm:$0xff]  }
 0x120   :  { %1839 = vmatprep.subr.bf16.mxu0 %v4208_v49  ;;  %2003 = vmatprep.subr.bf16.mxu1 %v4211_v50  ;;  %v4296_v49 = vld [vmem:[#allocation7 + $0xa0] ss:$16 sps:$4 sm:$0xff]   ;;  %v4299_v50 = vld [vmem:[#allocation7 + $0xa8] ss:$16 sps:$4 sm:$0xff]  }
 0x123   :  { %1840 = vmatpush1.bf16.msra.mxu0 %v4206_v51  ;;  %2004 = vmatpush1.bf16.msra.mxu1 %v4209_v52  ;;  %v4304_v51 = vld [vmem:[#allocation7 + $0xc4] ss:$16 sps:$4 sm:$0xff]   ;;  %v4307_v52 = vld [vmem:[#allocation7 + $0xcc] ss:$16 sps:$4 sm:$0xff]  }
 0x124   :  { %1841 = vmatprep.subr.bf16.mxu0 %v4214_v53  ;;  %2005 = vmatprep.subr.bf16.mxu1 %v4217_v54  ;;  %v4302_v53 = vld [vmem:[#allocation7 + $0xc0] ss:$16 sps:$4 sm:$0xff]   ;;  %v4305_v54 = vld [vmem:[#allocation7 + $0xc8] ss:$16 sps:$4 sm:$0xff]  }
 0x127   :  { %1842 = vmatpush1.bf16.msra.mxu0 %v4212_v55  ;;  %2006 = vmatpush1.bf16.msra.mxu1 %v4215_v56  ;;  %v4310_v55 = vld [vmem:[#allocation7 + $0xe4] ss:$16 sps:$4 sm:$0xff]   ;;  %v4313_v56 = vld [vmem:[#allocation7 + $0xec] ss:$16 sps:$4 sm:$0xff]  }
 0x128   :  { %1843 = vmatprep.subr.bf16.mxu0 %v4220_v57  ;;  %2007 = vmatprep.subr.bf16.mxu1 %v4223_v58  ;;  %v4308_v57 = vld [vmem:[#allocation7 + $0xe0] ss:$16 sps:$4 sm:$0xff]   ;;  %v4311_v58 = vld [vmem:[#allocation7 + $0xe8] ss:$16 sps:$4 sm:$0xff]  }
 0x12b   :  { %1844 = vmatpush1.bf16.msra.mxu0 %v4218_v59  ;;  %2008 = vmatpush1.bf16.msra.mxu1 %v4221_v60  ;;  %v4316_v59 = vld [vmem:[#allocation7 + $0x104] ss:$16 sps:$4 sm:$0xff]   ;;  %v4319_v60 = vld [vmem:[#allocation7 + $0x10c] ss:$16 sps:$4 sm:$0xff]  }
 0x12c   :  { %1845 = vmatprep.subr.bf16.mxu0 %v4226_v61  ;;  %2009 = vmatprep.subr.bf16.mxu1 %v4229_v62  ;;  %v4314_v61 = vld [vmem:[#allocation7 + $0x100] ss:$16 sps:$4 sm:$0xff]   ;;  %v4317_v62 = vld [vmem:[#allocation7 + $0x108] ss:$16 sps:$4 sm:$0xff]  }
 0x12f   :  { %1846 = vmatpush1.bf16.msra.mxu0 %v4224_v63  ;;  %2010 = vmatpush1.bf16.msra.mxu1 %v4227_v0  ;;  %v4322_v63 = vld [vmem:[#allocation7 + $0x124] ss:$16 sps:$4 sm:$0xff]   ;;  %v4325_v0 = vld [vmem:[#allocation7 + $0x12c] ss:$16 sps:$4 sm:$0xff]  }
 0x130   :  { %1847 = vmatprep.subr.bf16.mxu0 %v4232_v1  ;;  %2011 = vmatprep.subr.bf16.mxu1 %v4235_v2  ;;  %v4320_v1 = vld [vmem:[#allocation7 + $0x120] ss:$16 sps:$4 sm:$0xff]   ;;  %v4323_v2 = vld [vmem:[#allocation7 + $0x128] ss:$16 sps:$4 sm:$0xff]  }
 0x133   :  { %1848 = vmatpush1.bf16.msra.mxu0 %v4230_v3  ;;  %2012 = vmatpush1.bf16.msra.mxu1 %v4233_v4  ;;  %v4328_v3 = vld [vmem:[#allocation7 + $0x144] ss:$16 sps:$4 sm:$0xff]   ;;  %v4331_v4 = vld [vmem:[#allocation7 + $0x14c] ss:$16 sps:$4 sm:$0xff]  }
 0x134   :  { %1849 = vmatprep.subr.bf16.mxu0 %v4238_v5  ;;  %2013 = vmatprep.subr.bf16.mxu1 %v4241_v6  ;;  %v4326_v5 = vld [vmem:[#allocation7 + $0x140] ss:$16 sps:$4 sm:$0xff]   ;;  %v4329_v6 = vld [vmem:[#allocation7 + $0x148] ss:$16 sps:$4 sm:$0xff]  }
 0x137   :  { %1850 = vmatpush1.bf16.msra.mxu0 %v4236_v7  ;;  %2014 = vmatpush1.bf16.msra.mxu1 %v4239_v8  ;;  %v4334_v7 = vld [vmem:[#allocation7 + $0x164] ss:$16 sps:$4 sm:$0xff]   ;;  %v4337_v8 = vld [vmem:[#allocation7 + $0x16c] ss:$16 sps:$4 sm:$0xff]  }
 0x138   :  { %1851 = vmatprep.subr.bf16.mxu0 %v4244_v9  ;;  %2015 = vmatprep.subr.bf16.mxu1 %v4247_v10  ;;  %v4332_v9 = vld [vmem:[#allocation7 + $0x160] ss:$16 sps:$4 sm:$0xff]   ;;  %v4335_v10 = vld [vmem:[#allocation7 + $0x168] ss:$16 sps:$4 sm:$0xff]  }
 0x13b   :  { %1852 = vmatpush1.bf16.msra.mxu0 %v4242_v11  ;;  %2016 = vmatpush1.bf16.msra.mxu1 %v4245_v12  ;;  %v4340_v11 = vld [vmem:[#allocation7 + $0x184] ss:$16 sps:$4 sm:$0xff]   ;;  %v4343_v12 = vld [vmem:[#allocation7 + $0x18c] ss:$16 sps:$4 sm:$0xff]  }
 0x13c   :  { %1853 = vmatprep.subr.bf16.mxu0 %v4250_v13  ;;  %2017 = vmatprep.subr.bf16.mxu1 %v4253_v14  ;;  %v4338_v13 = vld [vmem:[#allocation7 + $0x180] ss:$16 sps:$4 sm:$0xff]   ;;  %v4341_v14 = vld [vmem:[#allocation7 + $0x188] ss:$16 sps:$4 sm:$0xff]  }
 0x13f   :  { %1854 = vmatpush1.bf16.msra.mxu0 %v4248_v16  ;;  %2018 = vmatpush1.bf16.msra.mxu1 %v4251_v17  ;;  %v4346_v16 = vld [vmem:[#allocation7 + $0x1a4] ss:$16 sps:$4 sm:$0xff]   ;;  %v4349_v17 = vld [vmem:[#allocation7 + $0x1ac] ss:$16 sps:$4 sm:$0xff]  }
 0x140   :  { %1855 = vmatprep.subr.bf16.mxu0 %v4256_v18  ;;  %2019 = vmatprep.subr.bf16.mxu1 %v4259_v19  ;;  %v4344_v18 = vld [vmem:[#allocation7 + $0x1a0] ss:$16 sps:$4 sm:$0xff]   ;;  %v4347_v19 = vld [vmem:[#allocation7 + $0x1a8] ss:$16 sps:$4 sm:$0xff]  }
 0x143   :  { %1856 = vmatpush1.bf16.msra.mxu0 %v4254_v22  ;;  %2020 = vmatpush1.bf16.msra.mxu1 %v4257_v23  ;;  %v4352_v22 = vld [vmem:[#allocation7 + $0x1c4] ss:$16 sps:$4 sm:$0xff]   ;;  %v4355_v23 = vld [vmem:[#allocation7 + $0x1cc] ss:$16 sps:$4 sm:$0xff]  }
 0x144   :  { %1857 = vmatprep.subr.bf16.mxu0 %v4262_v24  ;;  %2021 = vmatprep.subr.bf16.mxu1 %v4265_v25  ;;  %v4350_v24 = vld [vmem:[#allocation7 + $0x1c0] ss:$16 sps:$4 sm:$0xff]   ;;  %v4353_v25 = vld [vmem:[#allocation7 + $0x1c8] ss:$16 sps:$4 sm:$0xff]  }
 0x147   :  { %1858 = vmatpush1.bf16.msra.mxu0 %v4260_v26  ;;  %2022 = vmatpush1.bf16.msra.mxu1 %v4263_v27  ;;  %v4358_v26 = vld [vmem:[#allocation7 + $0x1e4] ss:$16 sps:$4 sm:$0xff]   ;;  %v4361_v27 = vld [vmem:[#allocation7 + $0x1ec] ss:$16 sps:$4 sm:$0xff]  }
 0x148   :  { %2830 = vmatprep.subr.bf16.mxu0 %v4268_v28  ;;  %2912 = vmatprep.subr.bf16.mxu1 %v4271_v29  ;;  %v4356_v28 = vld [vmem:[#allocation7 + $0x1e0] ss:$16 sps:$4 sm:$0xff]   ;;  %v4359_v29 = vld [vmem:[#allocation7 + $0x1e8] ss:$16 sps:$4 sm:$0xff]  }
 0x14a   :  { %1860 = vmatmul.mubr.bf16.vlgmr.msra.gmra.mrb[0].mxu0 %v413_v30  ;;  %2024 = vmatmul.mubr.bf16.vlgmr.msra.gmra.mrb[0].mxu1 %v413_v30  ;;  %v4364_v30 = vld [vmem:[#allocation7 + $0x204] ss:$16 sps:$4 sm:$0xff]  }
 0x14b   :  { %2831 = vmatpush1.bf16.msra.mxu0 %v4266_v31  ;;  %2913 = vmatpush1.bf16.msra.mxu1 %v4269_v15  ;;  %v4367_v31 = vld [vmem:[#allocation7 + $0x20c] ss:$16 sps:$4 sm:$0xff]   ;;  %v348_v15 = vsub.s32 0, %v4697_v42 }
 0x14c   :  { %2832 = vmatprep.subr.bf16.mxu0 %v4274_v32  ;;  %2914 = vmatprep.subr.bf16.mxu1 %v4277_v33  ;;  %v4730_v32 = vld [vmem:[%s4775_s2] sm:$0xf]  ;;  %v352_v33 = vsub.s32 1, %v4697_v42 }
 0x14f   :  { %2833 = vmatpush1.bf16.msra.mxu0 %v4272_v34  ;;  %2915 = vmatpush1.bf16.msra.mxu1 %v4275_v35  ;;  %v360_v34 = vsub.s32 3, %v4697_v42  ;;  %v349_v35 = vrot.slane %v4730_v32, %v348_v15 }
 0x150   :  { %2834 = vmatprep.subr.bf16.mxu0 %v4280_v36  ;;  %2916 = vmatprep.subr.bf16.mxu1 %v4283_v20  ;;  %v353_v36 = vrot.slane %v4730_v32, %v352_v33 }
 0x151   :  { %v361_v20 = vrot.slane %v4730_v32, %v360_v34 }
 0x153   :  { %2835 = vmatpush1.bf16.msra.mxu0 %v4278_v21  ;;  %2917 = vmatpush1.bf16.msra.mxu1 %v4281_v37 }
 0x154   :  { %2836 = vmatprep.subr.bf16.mxu0 %v4286_v38  ;;  %2918 = vmatprep.subr.bf16.mxu1 %v4289_v39 }
 0x157   :  { %2837 = vmatpush1.bf16.msra.mxu0 %v4284_v40  ;;  %2919 = vmatpush1.bf16.msra.mxu1 %v4287_v41 }
 0x158   :  { %2838 = vmatprep.subr.bf16.mxu0 %v4292_v43  ;;  %2920 = vmatprep.subr.bf16.mxu1 %v4295_v44 }
 0x15b   :  { %2839 = vmatpush1.bf16.msra.mxu0 %v4290_v45  ;;  %2921 = vmatpush1.bf16.msra.mxu1 %v4293_v46 }
 0x15c   :  { %2840 = vmatprep.subr.bf16.mxu0 %v4298_v47  ;;  %2922 = vmatprep.subr.bf16.mxu1 %v4301_v48 }
 0x15f   :  { %2841 = vmatpush1.bf16.msra.mxu0 %v4296_v49  ;;  %2923 = vmatpush1.bf16.msra.mxu1 %v4299_v50 }
 0x160   :  { %2842 = vmatprep.subr.bf16.mxu0 %v4304_v51  ;;  %2924 = vmatprep.subr.bf16.mxu1 %v4307_v52  ;;  %v4362_v52 = vld [vmem:[#allocation7 + $0x200] ss:$16 sps:$4 sm:$0xff]  }
 0x163   :  { %2843 = vmatpush1.bf16.msra.mxu0 %v4302_v53  ;;  %2925 = vmatpush1.bf16.msra.mxu1 %v4305_v54  ;;  %v4365_v53 = vld [vmem:[#allocation7 + $0x208] ss:$16 sps:$4 sm:$0xff]  }
 0x164   :  { %2844 = vmatprep.subr.bf16.mxu0 %v4310_v55  ;;  %2926 = vmatprep.subr.bf16.mxu1 %v4313_v56  ;;  %v4370_v55 = vld [vmem:[#allocation7 + $0x224] ss:$16 sps:$4 sm:$0xff]   ;;  %v4373_v56 = vld [vmem:[#allocation7 + $0x22c] ss:$16 sps:$4 sm:$0xff]  }
 0x167   :  { %2845 = vmatpush1.bf16.msra.mxu0 %v4308_v57  ;;  %2927 = vmatpush1.bf16.msra.mxu1 %v4311_v58  ;;  %v4368_v58 = vld [vmem:[#allocation7 + $0x220] ss:$16 sps:$4 sm:$0xff]  }
 0x168   :  { %2846 = vmatprep.subr.bf16.mxu0 %v4316_v59  ;;  %2928 = vmatprep.subr.bf16.mxu1 %v4319_v60  ;;  %v4371_v59 = vld [vmem:[#allocation7 + $0x228] ss:$16 sps:$4 sm:$0xff]   ;;  %v4376_v60 = vld [vmem:[#allocation7 + $0x244] ss:$16 sps:$4 sm:$0xff]  }
 0x16b   :  { %2847 = vmatpush1.bf16.msra.mxu0 %v4314_v61  ;;  %2929 = vmatpush1.bf16.msra.mxu1 %v4317_v62  ;;  %v4379_v61 = vld [vmem:[#allocation7 + $0x24c] ss:$16 sps:$4 sm:$0xff]   ;;  %v4374_v62 = vld [vmem:[#allocation7 + $0x240] ss:$16 sps:$4 sm:$0xff]  }
 0x16c   :  { %2848 = vmatprep.subr.bf16.mxu0 %v4322_v63  ;;  %2930 = vmatprep.subr.bf16.mxu1 %v4325_v0  ;;  %v4377_v63 = vld [vmem:[#allocation7 + $0x248] ss:$16 sps:$4 sm:$0xff]   ;;  %v4382_v0 = vld [vmem:[#allocation7 + $0x264] ss:$16 sps:$4 sm:$0xff]  }
 0x16f   :  { %2849 = vmatpush1.bf16.msra.mxu0 %v4320_v1  ;;  %2931 = vmatpush1.bf16.msra.mxu1 %v4323_v2  ;;  %v4385_v1 = vld [vmem:[#allocation7 + $0x26c] ss:$16 sps:$4 sm:$0xff]   ;;  %v4380_v2 = vld [vmem:[#allocation7 + $0x260] ss:$16 sps:$4 sm:$0xff]  }
 0x170   :  { %2850 = vmatprep.subr.bf16.mxu0 %v4328_v3  ;;  %2932 = vmatprep.subr.bf16.mxu1 %v4331_v4  ;;  %v4383_v3 = vld [vmem:[#allocation7 + $0x268] ss:$16 sps:$4 sm:$0xff]   ;;  %v4388_v4 = vld [vmem:[#allocation7 + $0x284] ss:$16 sps:$4 sm:$0xff]  }
 0x173   :  { %2851 = vmatpush1.bf16.msra.mxu0 %v4326_v5  ;;  %2933 = vmatpush1.bf16.msra.mxu1 %v4329_v6  ;;  %v4391_v5 = vld [vmem:[#allocation7 + $0x28c] ss:$16 sps:$4 sm:$0xff]   ;;  %v4386_v6 = vld [vmem:[#allocation7 + $0x280] ss:$16 sps:$4 sm:$0xff]  }
 0x174   :  { %2852 = vmatprep.subr.bf16.mxu0 %v4334_v7  ;;  %2934 = vmatprep.subr.bf16.mxu1 %v4337_v8  ;;  %v4389_v7 = vld [vmem:[#allocation7 + $0x288] ss:$16 sps:$4 sm:$0xff]   ;;  %v4394_v8 = vld [vmem:[#allocation7 + $0x2a4] ss:$16 sps:$4 sm:$0xff]  }
 0x177   :  { %2853 = vmatpush1.bf16.msra.mxu0 %v4332_v9  ;;  %2935 = vmatpush1.bf16.msra.mxu1 %v4335_v10  ;;  %v4397_v9 = vld [vmem:[#allocation7 + $0x2ac] ss:$16 sps:$4 sm:$0xff]   ;;  %v4392_v10 = vld [vmem:[#allocation7 + $0x2a0] ss:$16 sps:$4 sm:$0xff]  }
 0x178   :  { %2854 = vmatprep.subr.bf16.mxu0 %v4340_v11  ;;  %2936 = vmatprep.subr.bf16.mxu1 %v4343_v12  ;;  %v4395_v11 = vld [vmem:[#allocation7 + $0x2a8] ss:$16 sps:$4 sm:$0xff]   ;;  %v4400_v12 = vld [vmem:[#allocation7 + $0x2c4] ss:$16 sps:$4 sm:$0xff]  }
 0x17b   :  { %2855 = vmatpush1.bf16.msra.mxu0 %v4338_v13  ;;  %2937 = vmatpush1.bf16.msra.mxu1 %v4341_v14  ;;  %v4403_v13 = vld [vmem:[#allocation7 + $0x2cc] ss:$16 sps:$4 sm:$0xff]   ;;  %v4398_v14 = vld [vmem:[#allocation7 + $0x2c0] ss:$16 sps:$4 sm:$0xff]  }
 0x17c   :  { %2856 = vmatprep.subr.bf16.mxu0 %v4346_v16  ;;  %2938 = vmatprep.subr.bf16.mxu1 %v4349_v17  ;;  %v4401_v16 = vld [vmem:[#allocation7 + $0x2c8] ss:$16 sps:$4 sm:$0xff]   ;;  %v4406_v17 = vld [vmem:[#allocation7 + $0x2e4] ss:$16 sps:$4 sm:$0xff]  }
 0x17f   :  { %2857 = vmatpush1.bf16.msra.mxu0 %v4344_v18  ;;  %2939 = vmatpush1.bf16.msra.mxu1 %v4347_v19  ;;  %v4409_v18 = vld [vmem:[#allocation7 + $0x2ec] ss:$16 sps:$4 sm:$0xff]   ;;  %v4404_v19 = vld [vmem:[#allocation7 + $0x2e0] ss:$16 sps:$4 sm:$0xff]  }
 0x180   :  { %2858 = vmatprep.subr.bf16.mxu0 %v4352_v22  ;;  %2940 = vmatprep.subr.bf16.mxu1 %v4355_v23  ;;  %v4407_v22 = vld [vmem:[#allocation7 + $0x2e8] ss:$16 sps:$4 sm:$0xff]   ;;  %v4412_v23 = vld [vmem:[#allocation7 + $0x304] ss:$16 sps:$4 sm:$0xff]  }
 0x183   :  { %2859 = vmatpush1.bf16.msra.mxu0 %v4350_v24  ;;  %2941 = vmatpush1.bf16.msra.mxu1 %v4353_v25  ;;  %v4415_v24 = vld [vmem:[#allocation7 + $0x30c] ss:$16 sps:$4 sm:$0xff]   ;;  %v4410_v25 = vld [vmem:[#allocation7 + $0x300] ss:$16 sps:$4 sm:$0xff]  }
 0x184   :  { %2860 = vmatprep.subr.bf16.mxu0 %v4358_v26  ;;  %2942 = vmatprep.subr.bf16.mxu1 %v4361_v27  ;;  %v4413_v26 = vld [vmem:[#allocation7 + $0x308] ss:$16 sps:$4 sm:$0xff]   ;;  %v4418_v27 = vld [vmem:[#allocation7 + $0x324] ss:$16 sps:$4 sm:$0xff]  }
 0x187   :  { %2861 = vmatpush1.bf16.msra.mxu0 %v4356_v28  ;;  %2943 = vmatpush1.bf16.msra.mxu1 %v4359_v29  ;;  %v4421_v28 = vld [vmem:[#allocation7 + $0x32c] ss:$16 sps:$4 sm:$0xff]   ;;  %v4416_v29 = vld [vmem:[#allocation7 + $0x320] ss:$16 sps:$4 sm:$0xff]  }
 0x188   :  { %2871 = vmatprep.subr.bf16.mxu0 %v4364_v30  ;;  %2953 = vmatprep.subr.bf16.mxu1 %v4367_v31  ;;  %v4419_v30 = vld [vmem:[#allocation7 + $0x328] ss:$16 sps:$4 sm:$0xff]   ;;  %v4424_v31 = vld [vmem:[#allocation7 + $0x344] ss:$16 sps:$4 sm:$0xff]  }
 0x21d   :  { %v1861_v21 = vpop.f32.mrb[0].mxu0  ;;  %v4743_v37 = vpop.f32.mrb[0].mxu1 }
 0x21e   :  { %v3832_v38 = vadd.f32 %v1861_v21, %v349_v35  ;;  %v1863_v39 = vpop.f32.mrb[1].mxu0  ;;  %v2027_v40 = vpop.f32.mrb[1].mxu1  ;;  %v4427_v35 = vld [vmem:[#allocation7 + $0x34c] ss:$16 sps:$4 sm:$0xff]   ;;  %v4430_v21 = vld [vmem:[#allocation7 + $0x364] ss:$16 sps:$4 sm:$0xff]  }
 0x21f   :  { %v3833_v41 = vadd.f32 %v1863_v39, %v353_v36  ;;  %v3835_v43 = vadd.f32 %v2027_v40, %v361_v20  ;;  %v1865_v44 = vpop.f32.mrb[2].mxu0  ;;  %v2029_v45 = vpop.f32.mrb[2].mxu1  ;;  %v4422_v36 = vld [vmem:[#allocation7 + $0x340] ss:$16 sps:$4 sm:$0xff]   ;;  %v4425_v20 = vld [vmem:[#allocation7 + $0x348] ss:$16 sps:$4 sm:$0xff]  }
 0x220   :  { %v2032_v46 = vmax.f32 %v3832_v38, 0.0  ;;  %v1866_v47 = vpop.f32.mrb[3].mxu0  ;;  %v2030_v48 = vpop.f32.mrb[3].mxu1  ;;  %v4433_v38 = vld [vmem:[#allocation7 + $0x36c] ss:$16 sps:$4 sm:$0xff]  }
 0x221   :  { %v2033_v49 = vmax.f32 %v3833_v41, 0.0  ;;  %v2035_v50 = vmax.f32 %v3835_v43, 0.0  ;;  %v4428_v39 = vld [vmem:[#allocation7 + $0x360] ss:$16 sps:$4 sm:$0xff]   ;;  %v4431_v40 = vld [vmem:[#allocation7 + $0x368] ss:$16 sps:$4 sm:$0xff]  }
 0x222   :  { %v2036_v54 = vpack.c.bf16 %v2032_v46, %v2032_v46  ;;  %v4436_v41 = vld [vmem:[#allocation7 + $0x384] ss:$16 sps:$4 sm:$0xff]   ;;  %v4439_v43 = vld [vmem:[#allocation7 + $0x38c] ss:$16 sps:$4 sm:$0xff]   ;;  %v4434_v44 = vld [vmem:[#allocation7 + $0x380] ss:$16 sps:$4 sm:$0xff]  }
 0x223   :  { %v2037_v51 = vpack.c.bf16 %v2033_v49, %v2033_v49  ;;  %v2039_v57 = vpack.c.bf16 %v2035_v50, %v2035_v50  ;;  %v4437_v45 = vld [vmem:[#allocation7 + $0x388] ss:$16 sps:$4 sm:$0xff]   ;;  %v356_v46 = vsub.s32 2, %v4697_v42  ;;  %v4442_v47 = vld [vmem:[#allocation7 + $0x3a4] ss:$16 sps:$4 sm:$0xff]  }
 0x224   :  { %v4445_v48 = vld [vmem:[#allocation7 + $0x3ac] ss:$16 sps:$4 sm:$0xff]   ;;  %v4440_v49 = vld [vmem:[#allocation7 + $0x3a0] ss:$16 sps:$4 sm:$0xff]   ;;  %v4443_v50 = vld [vmem:[#allocation7 + $0x3a8] ss:$16 sps:$4 sm:$0xff]  }
 0x225   :  { %2862 = vmatprep.mubr.bf16.mxu0 %v2037_v51  ;;  %2944 = vmatprep.mubr.bf16.mxu1 %v2037_v51  ;;  %v357_v51 = vrot.slane %v4730_v32, %v356_v46  ;;  %v4458_v32 = vld [vmem:[#allocation8 + $0x40] sm:$0xff]  }
 0x226   :  { %2863 = vmatmul.mubr.bf16.vlgmr.msra.gmra.mrb[4].mxu0 %v2036_v54  ;;  %2945 = vmatmul.mubr.bf16.vlgmr.msra.gmra.mrb[4].mxu1 %v2036_v54  ;;  %v4446_v54 = vld [vmem:[#allocation7 + $0x3c0] ss:$16 sps:$4 sm:$0xff]  }
 0x227   :  { %2872 = vmatpush1.bf16.msra.mxu0 %v4362_v52  ;;  %2954 = vmatpush1.bf16.msra.mxu1 %v4365_v53  ;;  %v4448_v52 = vld [vmem:[#allocation7 + $0x3c4] ss:$16 sps:$4 sm:$0xff]   ;;  %v4451_v53 = vld [vmem:[#allocation7 + $0x3cc] ss:$16 sps:$4 sm:$0xff]  }
 0x228   :  { %2903 = vmatprep.mubr.bf16.mxu0 %v2039_v57  ;;  %2985 = vmatprep.mubr.bf16.mxu1 %v2039_v57  ;;  %v4454_v57 = vld [vmem:[#allocation7 + $0x3e4] ss:$16 sps:$4 sm:$0xff]  }
 0x229   :  { %2873 = vmatprep.subr.bf16.mxu0 %v4370_v55  ;;  %2955 = vmatprep.subr.bf16.mxu1 %v4373_v56  ;;  %v4449_v55 = vld [vmem:[#allocation7 + $0x3c8] ss:$16 sps:$4 sm:$0xff]   ;;  %v3834_v56 = vadd.f32 %v4743_v37, %v357_v51 }
 0x22a   :  { %v4462_v37 = vld [vmem:[#allocation8 + $0x48] sm:$0xff]  }
 0x22b   :  { %2874 = vmatpush1.bf16.msra.mxu0 %v4368_v58  ;;  %2956 = vmatpush1.bf16.msra.mxu1 %v4371_v59  ;;  %v4457_v58 = vld [vmem:[#allocation7 + $0x3ec] ss:$16 sps:$4 sm:$0xff]   ;;  %v4452_v59 = vld [vmem:[#allocation7 + $0x3e0] ss:$16 sps:$4 sm:$0xff]  }
 0x22c   :  { %2875 = vmatprep.subr.bf16.mxu0 %v4376_v60  ;;  %2957 = vmatprep.subr.bf16.mxu1 %v4379_v61  ;;  %v4455_v60 = vld [vmem:[#allocation7 + $0x3e8] ss:$16 sps:$4 sm:$0xff]   ;;  %v2034_v61 = vmax.f32 %v3834_v56, 0.0 }
 0x22f   :  { %2876 = vmatpush1.bf16.msra.mxu0 %v4374_v62  ;;  %2958 = vmatpush1.bf16.msra.mxu1 %v4377_v63  ;;  %v4459_v62 = vld [vmem:[#allocation8 + $0xc0] sm:$0xff]  }
 0x230   :  { %2877 = vmatprep.subr.bf16.mxu0 %v4382_v0  ;;  %2959 = vmatprep.subr.bf16.mxu1 %v4385_v1  ;;  %v4460_v63 = vld [vmem:[#allocation8] sm:$0xff]   ;;  %v2038_v1 = vpack.c.bf16 %v2034_v61, %v2034_v61 }
 0x231   :  { %v4461_v0 = vld [vmem:[#allocation8 + $0x80] sm:$0xff]  }
 0x233   :  { %2878 = vmatpush1.bf16.msra.mxu0 %v4380_v2  ;;  %2960 = vmatpush1.bf16.msra.mxu1 %v4383_v3  ;;  %v4463_v2 = vld [vmem:[#allocation8 + $0xc8] sm:$0xff]  }
 0x234   :  { %2879 = vmatprep.subr.bf16.mxu0 %v4388_v4  ;;  %2961 = vmatprep.subr.bf16.mxu1 %v4391_v5  ;;  %v4464_v3 = vld [vmem:[#allocation8 + $0x8] sm:$0xff]   ;;  %v4466_v5 = vld [vmem:[#allocation8 + $0x50] sm:$0xff]  }
 0x235   :  { %v4465_v4 = vld [vmem:[#allocation8 + $0x88] sm:$0xff]  }
 0x237   :  { %2880 = vmatpush1.bf16.msra.mxu0 %v4386_v6  ;;  %2962 = vmatpush1.bf16.msra.mxu1 %v4389_v7  ;;  %v4467_v6 = vld [vmem:[#allocation8 + $0xd0] sm:$0xff]  }
 0x238   :  { %2881 = vmatprep.subr.bf16.mxu0 %v4394_v8  ;;  %2963 = vmatprep.subr.bf16.mxu1 %v4397_v9  ;;  %v4468_v7 = vld [vmem:[#allocation8 + $0x10] sm:$0xff]   ;;  %v4470_v9 = vld [vmem:[#allocation8 + $0x58] sm:$0xff]  }
 0x239   :  { %v4469_v8 = vld [vmem:[#allocation8 + $0x90] sm:$0xff]  }
 0x23b   :  { %2882 = vmatpush1.bf16.msra.mxu0 %v4392_v10  ;;  %2964 = vmatpush1.bf16.msra.mxu1 %v4395_v11  ;;  %v4471_v10 = vld [vmem:[#allocation8 + $0xd8] sm:$0xff]  }
 0x23c   :  { %2883 = vmatprep.subr.bf16.mxu0 %v4400_v12  ;;  %2965 = vmatprep.subr.bf16.mxu1 %v4403_v13  ;;  %v4472_v11 = vld [vmem:[#allocation8 + $0x18] sm:$0xff]   ;;  %v4474_v13 = vld [vmem:[#allocation8 + $0x60] sm:$0xff]  }
 0x23d   :  { %v4473_v12 = vld [vmem:[#allocation8 + $0x98] sm:$0xff]  }
 0x23f   :  { %2884 = vmatpush1.bf16.msra.mxu0 %v4398_v14  ;;  %2966 = vmatpush1.bf16.msra.mxu1 %v4401_v16  ;;  %v4475_v14 = vld [vmem:[#allocation8 + $0xe0] sm:$0xff]  }
 0x240   :  { %2885 = vmatprep.subr.bf16.mxu0 %v4406_v17  ;;  %2967 = vmatprep.subr.bf16.mxu1 %v4409_v18  ;;  %v4476_v16 = vld [vmem:[#allocation8 + $0x20] sm:$0xff]   ;;  %v4478_v18 = vld [vmem:[#allocation8 + $0x68] sm:$0xff]  }
 0x241   :  { %v4477_v17 = vld [vmem:[#allocation8 + $0xa0] sm:$0xff]  }
 0x243   :  { %2886 = vmatpush1.bf16.msra.mxu0 %v4404_v19  ;;  %2968 = vmatpush1.bf16.msra.mxu1 %v4407_v22  ;;  %v4479_v19 = vld [vmem:[#allocation8 + $0xe8] sm:$0xff]  }
 0x244   :  { %2887 = vmatprep.subr.bf16.mxu0 %v4412_v23  ;;  %2969 = vmatprep.subr.bf16.mxu1 %v4415_v24  ;;  %v4480_v22 = vld [vmem:[#allocation8 + $0x28] sm:$0xff]   ;;  %v4482_v24 = vld [vmem:[#allocation8 + $0x70] sm:$0xff]  }
 0x245   :  { %v4481_v23 = vld [vmem:[#allocation8 + $0xa8] sm:$0xff]  }
 0x247   :  { %2888 = vmatpush1.bf16.msra.mxu0 %v4410_v25  ;;  %2970 = vmatpush1.bf16.msra.mxu1 %v4413_v26  ;;  %v4483_v25 = vld [vmem:[#allocation8 + $0xf0] sm:$0xff]  }
 0x248   :  { %2889 = vmatprep.subr.bf16.mxu0 %v4418_v27  ;;  %2971 = vmatprep.subr.bf16.mxu1 %v4421_v28  ;;  %v4484_v26 = vld [vmem:[#allocation8 + $0x30] sm:$0xff]   ;;  %v4486_v28 = vld [vmem:[#allocation8 + $0x78] sm:$0xff]  }
 0x249   :  { %v4485_v27 = vld [vmem:[#allocation8 + $0xb0] sm:$0xff]  }
 0x24b   :  { %2890 = vmatpush1.bf16.msra.mxu0 %v4416_v29  ;;  %2972 = vmatpush1.bf16.msra.mxu1 %v4419_v30  ;;  %v4487_v29 = vld [vmem:[#allocation8 + $0xf8] sm:$0xff]  }
 0x24c   :  { %2891 = vmatprep.subr.bf16.mxu0 %v4424_v31  ;;  %2973 = vmatprep.subr.bf16.mxu1 %v4427_v35  ;;  %v4488_v30 = vld [vmem:[#allocation8 + $0x38] sm:$0xff]  }
 0x24d   :  { %v4489_v31 = vld [vmem:[#allocation8 + $0xb8] sm:$0xff]  }
 0x24e   :  { %v2168_v35 = vld [vmem:[%s4777_s4] sm:$0xf] }
 0x24f   :  { %2892 = vmatpush1.bf16.msra.mxu0 %v4422_v36  ;;  %2974 = vmatpush1.bf16.msra.mxu1 %v4425_v20  ;;  %v2173_v36 = vrot.slane %v2168_v35, %v348_v15  ;;  %v2181_v20 = vrot.slane %v2168_v35, %v356_v46 }
 0x250   :  { %2893 = vmatprep.subr.bf16.mxu0 %v4430_v21  ;;  %2975 = vmatprep.subr.bf16.mxu1 %v4433_v38  ;;  %v2177_v21 = vrot.slane %v2168_v35, %v352_v33  ;;  %v2185_v38 = vrot.slane %v2168_v35, %v360_v34 }
 0x253   :  { %2894 = vmatpush1.bf16.msra.mxu0 %v4428_v39  ;;  %2976 = vmatpush1.bf16.msra.mxu1 %v4431_v40 }
 0x254   :  { %2895 = vmatprep.subr.bf16.mxu0 %v4436_v41  ;;  %2977 = vmatprep.subr.bf16.mxu1 %v4439_v43 }
 0x257   :  { %2896 = vmatpush1.bf16.msra.mxu0 %v4434_v44  ;;  %2978 = vmatpush1.bf16.msra.mxu1 %v4437_v45 }
 0x258   :  { %2897 = vmatprep.subr.bf16.mxu0 %v4442_v47  ;;  %2979 = vmatprep.subr.bf16.mxu1 %v4445_v48 }
 0x25b   :  { %2898 = vmatpush1.bf16.msra.mxu0 %v4440_v49  ;;  %2980 = vmatpush1.bf16.msra.mxu1 %v4443_v50 }
 0x25c   :  { %2899 = vmatprep.subr.bf16.mxu0 %v4448_v52  ;;  %2981 = vmatprep.subr.bf16.mxu1 %v4451_v53 }
 0x25f   :  { %2900 = vmatpush1.bf16.msra.mxu0 %v4446_v54  ;;  %2982 = vmatpush1.bf16.msra.mxu1 %v4449_v55 }
 0x260   :  { %2901 = vmatprep.subr.bf16.mxu0 %v4454_v57  ;;  %2983 = vmatprep.subr.bf16.mxu1 %v4457_v58  ;;  %v3754_v58 = vld [vmem:[%s4779_s6] ss:$0 sm:$0xff] }
 0x263   :  { %2902 = vmatpush1.bf16.msra.mxu0 %v4452_v59  ;;  %2984 = vmatpush1.bf16.msra.mxu1 %v4455_v60 }
 0x264   :  { %3788 = vmatprep.subr.bf16.mxu0 %v4458_v32  ;;  %3810 = vmatprep.subr.bf16.mxu1 %v4459_v62 }
 0x266   :  { %2904 = vmatmul.mubr.bf16.vlgmr.msra.gmra.mrb[4].mxu0 %v2038_v1  ;;  %2986 = vmatmul.mubr.bf16.vlgmr.msra.gmra.mrb[4].mxu1 %v2038_v1 }
 0x267   :  { %3789 = vmatpush3.bf16.msra.mxu0 %v4460_v63  ;;  %3811 = vmatpush3.bf16.msra.mxu1 %v4461_v0 }
 0x268   :  { %3790 = vmatprep.subr.bf16.mxu0 %v4462_v37  ;;  %3812 = vmatprep.subr.bf16.mxu1 %v4463_v2 }
 0x26b   :  { %3791 = vmatpush3.bf16.msra.mxu0 %v4464_v3  ;;  %3813 = vmatpush3.bf16.msra.mxu1 %v4465_v4  ;;  %v3787_v3 = vld [vmem:[%s4780_s7] ss:$0 sm:$0xff] }
 0x26c   :  { %3792 = vmatprep.subr.bf16.mxu0 %v4466_v5  ;;  %3814 = vmatprep.subr.bf16.mxu1 %v4467_v6 }
 0x26f   :  { %3793 = vmatpush3.bf16.msra.mxu0 %v4468_v7  ;;  %3815 = vmatpush3.bf16.msra.mxu1 %v4469_v8  ;;  %v3359_v7 = vstv %s4781_s8 }
 0x270   :  { %3794 = vmatprep.subr.bf16.mxu0 %v4470_v9  ;;  %3816 = vmatprep.subr.bf16.mxu1 %v4471_v10 }
 0x273   :  { %3795 = vmatpush3.bf16.msra.mxu0 %v4472_v11  ;;  %3817 = vmatpush3.bf16.msra.mxu1 %v4473_v12 }
 0x274   :  { %3796 = vmatprep.subr.bf16.mxu0 %v4474_v13  ;;  %3818 = vmatprep.subr.bf16.mxu1 %v4475_v14 }
 0x277   :  { %3797 = vmatpush3.bf16.msra.mxu0 %v4476_v16  ;;  %3819 = vmatpush3.bf16.msra.mxu1 %v4477_v17 }
 0x278   :  { %3798 = vmatprep.subr.bf16.mxu0 %v4478_v18  ;;  %3820 = vmatprep.subr.bf16.mxu1 %v4479_v19 }
 0x27b   :  { %3799 = vmatpush3.bf16.msra.mxu0 %v4480_v22  ;;  %3821 = vmatpush3.bf16.msra.mxu1 %v4481_v23 }
 0x27c   :  { %3800 = vmatprep.subr.bf16.mxu0 %v4482_v24  ;;  %3822 = vmatprep.subr.bf16.mxu1 %v4483_v25 }
 0x27f   :  { %3801 = vmatpush3.bf16.msra.mxu0 %v4484_v26  ;;  %3823 = vmatpush3.bf16.msra.mxu1 %v4485_v27 }
 0x280   :  { %3802 = vmatprep.subr.bf16.mxu0 %v4486_v28  ;;  %3824 = vmatprep.subr.bf16.mxu1 %v4487_v29 }
 0x283   :  { %3803 = vmatpush3.bf16.msra.mxu0 %v4488_v30  ;;  %3825 = vmatpush3.bf16.msra.mxu1 %v4489_v31 }
 0x339   :  { %v2905_v39 = vpop.f32.mrb[4].mxu0  ;;  %v2987_v40 = vpop.f32.mrb[4].mxu1 }
 0x33a   :  { %v3836_v41 = vadd.f32 %v2905_v39, %v2173_v36  ;;  %v3838_v43 = vadd.f32 %v2987_v40, %v2181_v20  ;;  %v2907_v44 = vpop.f32.mrb[5].mxu0  ;;  %v2989_v45 = vpop.f32.mrb[5].mxu1 }
 0x33b   :  { %v3837_v47 = vadd.f32 %v2907_v44, %v2177_v21  ;;  %v3839_v48 = vadd.f32 %v2989_v45, %v2185_v38  ;;  %v2909_v49 = vpop.f32.mrb[6].mxu0  ;;  %v2991_v50 = vpop.f32.mrb[6].mxu1 }
 0x33c   :  { %v2994_v15 = vmax.f32 %v3836_v41, 0.0  ;;  %v2996_v51 = vmax.f32 %v3838_v43, 0.0  ;;  %v2910_v52 = vpop.f32.mrb[7].mxu0  ;;  %v2992_v46 = vpop.f32.mrb[7].mxu1 }
 0x33d   :  { %v2995_v53 = vmax.f32 %v3837_v47, 0.0  ;;  %v2997_v54 = vmax.f32 %v3839_v48, 0.0 }
 0x33e   :  { %v2998_v42 = vpack.c.bf16 %v2994_v15, %v2994_v15  ;;  %v3000_v34 = vpack.c.bf16 %v2996_v51, %v2996_v51 }
 0x33f   :  { %v2999_v33 = vpack.c.bf16 %v2995_v53, %v2995_v53  ;;  %v3001_v55 = vpack.c.bf16 %v2997_v54, %v2997_v54 }
 0x341   :  { %3297 = vmatprep.mubr.bf16.mxu0 %v2999_v33  ;;  %3337 = vmatprep.mubr.bf16.mxu1 %v3001_v55 }
 0x342   :  { %3298 = vmatmul.mubr.bf16.vlgmr.msra.gmra.mrb[8].mxu0 %v2998_v42  ;;  %3338 = vmatmul.mubr.bf16.vlgmr.msra.gmra.mrb[8].mxu1 %v3000_v34 }
 0x415   :  { %v3804_v56 = vpop.f32.mrb[8].mxu0  ;;  %v3826_v57 = vpop.f32.mrb[8].mxu1 }
 0x416   :  { %v3805_v59 = vpop.f32.mrb[9].mxu0  ;;  %v3827_v60 = vpop.f32.mrb[9].mxu1 }
 0x417   :  { %v3806_v61 = vadd.f32 %v3805_v59, %v3804_v56  ;;  %v3828_v32 = vadd.f32 %v3827_v60, %v3826_v57  ;;  %v3807_v62 = vpop.f32.mrb[10].mxu0  ;;  %v3829_v63 = vpop.f32.mrb[10].mxu1 }
 0x418   :  { %v3808_v0 = vpop.f32.mrb[11].mxu0  ;;  %v3830_v1 = vpop.f32.mrb[11].mxu1 }
 0x419   :  { %v3300_v37 = vadd.f32 %v3806_v61, %v3754_v58 }
 0x41b   :  { %v3340_v2 = vadd.f32 %v3828_v32, %v3300_v37 }
 0x41d   :  { %v3345_v4 = vmax.f32 %v3340_v2, 0.0 }
 0x41f   :  { %v3353_v5 = vmul.f32 %v3787_v3, %v3345_v4 }
 0x421   :  { %v3355_v6 = vsel %vm3354_vm0, %v3353_v5, 0.0 }
 0x422   :  { %3356 = vadd.xlane.f32.xlu0 %v3355_v6 }
 0x4af   :  { %v3357_v8 = vpop.xlane.xlu0 %3356 }
 0x4b0   :  { %v3360_v9 = vadd.f32 %v3359_v7, %v3357_v8 }
 0x4b2   :  { %3362 = vst.msk [vmem:[%s4782_s9] sm:$0x3] %vm3361_vm1, %v3360_v9 }
 0x4b3   :  { %3367 = vsyncpa [#allocation4], 1 }
 0x4b4   :  { %3368 = vsyncpa [#allocation6], 1 }
 0x4b5   :  { %3369 = vsyncpa [#allocation9], 1 }

</bundles_post_ra>
